<compile_context>
chip_gen: v7x
topology: tpu7x:2x2x1
jax: 0.10.0
libtpu: 0.0.40
codegen_flags: <defaults>
</compile_context>

<pallas_src>
import jax
import jax.numpy as jnp
from jax.experimental import pallas as pl
from jax.experimental.pallas import tpu as pltpu

BN_EPS = 1e-5                                  # torch BatchNorm1d default eps
DROP_P = 0.1                                   # dropout probability (`drop_out` ctor arg)
_DROP_THRESHOLD = int(DROP_P * (1 << 32))      # drop iff hash bits < threshold
_DROP_SCALE = 1.0 / (1.0 - DROP_P)             # inverted-dropout scale


def _fmix32(h):
    """murmur3 finalizer — 32-bit integer mix using plain VPU ops."""
    h = h ^ (h >> 16)
    h = h * jnp.uint32(0x85EBCA6B)
    h = h ^ (h >> 13)
    h = h * jnp.uint32(0xC2B2AE35)
    h = h ^ (h >> 16)
    return h


def dense_block_kernel(seed_ref, x_ref, w_ref, b_ref, gamma_ref, beta_ref, o_ref):
    j = pl.program_id(0)

    # ---- Linear: y = x @ W^T + b  (MXU, bf16 operands, f32 accumulate) ----
    y = jax.lax.dot_general(
        x_ref[...], w_ref[...],
        dimension_numbers=(((1,), (1,)), ((), ())),     # contract x[:, k] with w[:, k]
        preferred_element_type=jnp.float32,
    ) + b_ref[...]

    # ---- BatchNorm1d (training mode: biased per-feature batch statistics) ----
    # Single pass: sum / sum-of-squares; var = E[y^2] - mean^2, clamped >= 0.
    n = jnp.float32(y.shape[0])
    s = jnp.sum(y, axis=0, keepdims=True)
    ss = jnp.sum(y * y, axis=0, keepdims=True)
    mean = s / n
    var = jnp.maximum(ss / n - mean * mean, jnp.float32(0.0))
    y_hat = (y - mean) * jax.lax.rsqrt(var + BN_EPS) * gamma_ref[...] + beta_ref[...]

    # ---- Dropout (training mode, inverted scaling 1/(1-p)) ----
    # Counter-based hash keyed on (seed, global row, global column): per-tile
    # independent masks, integer threshold keep-test (no shift/convert/mul).
    # TODO(synk): RNG stream differs from torch.nn.Dropout's generator; the
    # Bernoulli(1-p) keep + 1/(1-p) scaling semantics are identical.
    rows, cols = y_hat.shape
    row = jax.lax.broadcasted_iota(jnp.int32, (rows, cols), 0).astype(jnp.uint32)
    col = jax.lax.broadcasted_iota(jnp.int32, (rows, cols), 1).astype(jnp.uint32)
    col = col + (j * cols).astype(jnp.uint32)
    seed_u = seed_ref[0].astype(jnp.uint32)
    h = _fmix32(seed_u + row * jnp.uint32(0x9E3779B1) + col * jnp.uint32(0x85EBCA77))
    keep = h >= jnp.uint32(_DROP_THRESHOLD)
    o_ref[...] = jnp.where(
        keep, y_hat * jnp.float32(_DROP_SCALE), jnp.float32(0.0)
    ).astype(o_ref.dtype)


def _pick_tile_out(N, IN, OUT, budget_bytes=24 * 1024 * 1024):
    """Largest OUT tile (multiple of 128) whose per-step working set fits VMEM."""
    cands = [t for t in (512, 256, 128) if OUT % t == 0]
    if not cands:
        return OUT          # small / odd OUT: single full-width tile (block == full dim)
    for tn in cands:
        est = (N * IN * 2            # x (bf16, same block every step)
               + 2 * tn * IN * 2     # weight tile (bf16, double-buffered)
               + 2 * N * tn * 4      # output tile (f32, double-buffered)
               + 4 * N * tn * 4)     # y / y_hat / hash temporaries
        if est <= budget_bytes:
            return tn
    return cands[-1]


def dense_block(x, w, b, gamma, beta, seed):
    """x: (N, IN); w: (OUT, IN); b, gamma, beta: (OUT,). Returns (N, OUT) f32."""
    # TODO(synk): BatchNorm1d training also updates running_mean/running_var
    # (unbiased var); those buffers are not computed/returned here.
    # TODO(synk): N is kept whole per tile (exact batch stats); very large N
    # would need a two-pass / accumulate-then-finalize scheme over a batch grid.
    N, IN = x.shape
    OUT = w.shape[0]
    TN = _pick_tile_out(N, IN, OUT)
    grid = (OUT // TN,)

    xb = jnp.asarray(x, jnp.bfloat16)                       # bf16 MXU operand
    wb = jnp.asarray(w, jnp.bfloat16)                       # (OUT, IN), no transpose
    b2 = jnp.asarray(b, jnp.float32).reshape(1, OUT)
    g2 = jnp.asarray(gamma, jnp.float32).reshape(1, OUT)
    be2 = jnp.asarray(beta, jnp.float32).reshape(1, OUT)
    seed_arr = jnp.asarray([seed], dtype=jnp.int32)

    return pl.pallas_call(
        dense_block_kernel,
        out_shape=jax.ShapeDtypeStruct((N, OUT), jnp.float32),
        grid=grid,
        in_specs=[
            pl.BlockSpec(memory_space=pltpu.MemorySpace.SMEM),       # seed scalar
            pl.BlockSpec((N, IN), lambda j: (0, 0)),                 # x (full, resident)
            pl.BlockSpec((TN, IN), lambda j: (j, 0)),                # weight tile
            pl.BlockSpec((1, TN), lambda j: (0, j)),                 # bias
            pl.BlockSpec((1, TN), lambda j: (0, j)),                 # gamma
            pl.BlockSpec((1, TN), lambda j: (0, j)),                 # beta
        ],
        out_specs=pl.BlockSpec((N, TN), lambda j: (0, j)),
        compiler_params=pltpu.CompilerParams(
            dimension_semantics=("parallel",),          # feature tiles -> megacore on v7x
            vmem_limit_bytes=32 * 1024 * 1024,
        ),
    )(seed_arr, xb, wb, b2, g2, be2)


if __name__ == "__main__":
    # Small shapes consistent with the module's forward: x is (batch, in_features).
    N, IN, OUT = 64, 32, 1024   # -> TN=512, grid=(2,) exercises the feature tiling

    key = jax.random.PRNGKey(0)
    kx, kw, kb = jax.random.split(key, 3)

    # Deterministic parameter init (torch.nn.Linear-style uniform bounds).
    bound = 1.0 / float(jnp.sqrt(jnp.float32(IN)))
    w = jax.random.uniform(kw, (OUT, IN), jnp.float32, -bound, bound)
    b = jax.random.uniform(kb, (OUT,), jnp.float32, -bound, bound)
    gamma = jnp.ones((OUT,), jnp.float32)     # BatchNorm1d weight init
    beta = jnp.zeros((OUT,), jnp.float32)     # BatchNorm1d bias init

    x = jax.random.normal(kx, (N, IN), jnp.float32)

    out = dense_block(x, w, b, gamma, beta, seed=0)
    out = jax.block_until_ready(out)

    assert out.shape == (N, OUT) and out.dtype == jnp.float32
    assert bool(jnp.all(jnp.isfinite(out)))
    # Dropout sanity: ~10% of outputs zeroed (wide tolerance, 64*1024 samples).
    frac_zero = float(jnp.mean(out == 0.0))
    assert 0.05 < frac_zero < 0.15, frac_zero
    print("KERNEL_OK")
</pallas_src>

<mosaic_0001>
module attributes {stable_mosaic.version = 11 : i64} {
  func.func @dense_block_kernel(%arg0: i32, %arg1: memref<1xi32, #tpu.memory_space<smem>>, %arg2: memref<64x32xbf16, #tpu.memory_space<vmem>>, %arg3: memref<512x32xbf16, #tpu.memory_space<vmem>>, %arg4: memref<1x512xf32, #tpu.memory_space<vmem>>, %arg5: memref<1x512xf32, #tpu.memory_space<vmem>>, %arg6: memref<1x512xf32, #tpu.memory_space<vmem>>, %arg7: memref<64x512xf32, #tpu.memory_space<vmem>>) attributes {dimension_semantics = [#tpu.dimension_semantics<parallel>], iteration_bounds = array<i64: 2>, scalar_prefetch = 0 : i64, scratch_operands = 0 : i64, tpu.core_type = #tpu.core_type<tc>, window_params = [{transform_indices = @transform_0, window_bounds = array<i64: 1>}, {pipeline_mode = #tpu.pipeline_mode<synchronous>, transform_indices = @transform_1, window_bounds = array<i64: 64, 32>}, {transform_indices = @transform_2, window_bounds = array<i64: 512, 32>}, {transform_indices = @transform_3, window_bounds = array<i64: 1, 512>}, {transform_indices = @transform_4, window_bounds = array<i64: 1, 512>}, {transform_indices = @transform_5, window_bounds = array<i64: 1, 512>}, {transform_indices = @transform_6, window_bounds = array<i64: 64, 512>}]} {
    %c0 = arith.constant 0 : index
    %c0_0 = arith.constant 0 : index
    %0 = vector.load %arg2[%c0, %c0_0] : memref<64x32xbf16, #tpu.memory_space<vmem>>, vector<64x32xbf16>
    %c0_1 = arith.constant 0 : index
    %c0_2 = arith.constant 0 : index
    %1 = vector.load %arg3[%c0_1, %c0_2] : memref<512x32xbf16, #tpu.memory_space<vmem>>, vector<512x32xbf16>
    %cst = arith.constant dense<0.000000e+00> : vector<64x512xf32>
    %2 = tpu.matmul %0, %1, %cst {dimension_numbers = #tpu.dot_dimension_numbers<[1], [1], [0], [0], [0, 0, 1, 0], [], []>} : vector<64x32xbf16>, vector<512x32xbf16>, vector<64x512xf32> -> vector<64x512xf32>
    %c0_3 = arith.constant 0 : index
    %c0_4 = arith.constant 0 : index
    %3 = vector.load %arg4[%c0_3, %c0_4] : memref<1x512xf32, #tpu.memory_space<vmem>>, vector<1x512xf32>
    %4 = vector.broadcast %3 : vector<1x512xf32> to vector<64x512xf32>
    %5 = arith.addf %2, %4 : vector<64x512xf32>
    %cst_5 = arith.constant dense<0.000000e+00> : vector<512xf32>
    %6 = vector.multi_reduction <add>, %5, %cst_5 [0] : vector<64x512xf32> to vector<512xf32>
    %7 = vector.shape_cast %6 : vector<512xf32> to vector<1x512xf32>
    %8 = arith.mulf %5, %5 : vector<64x512xf32>
    %cst_6 = arith.constant dense<0.000000e+00> : vector<512xf32>
    %9 = vector.multi_reduction <add>, %8, %cst_6 [0] : vector<64x512xf32> to vector<512xf32>
    %10 = vector.shape_cast %9 : vector<512xf32> to vector<1x512xf32>
    %cst_7 = arith.constant 6.400000e+01 : f32
    %11 = vector.broadcast %cst_7 : f32 to vector<1x512xf32>
    %12 = arith.divf %7, %11 : vector<1x512xf32>
    %cst_8 = arith.constant 6.400000e+01 : f32
    %13 = vector.broadcast %cst_8 : f32 to vector<1x512xf32>
    %14 = arith.divf %10, %13 : vector<1x512xf32>
    %15 = arith.mulf %12, %12 : vector<1x512xf32>
    %16 = arith.subf %14, %15 : vector<1x512xf32>
    %cst_9 = arith.constant 0.000000e+00 : f32
    %17 = vector.broadcast %cst_9 : f32 to vector<1x512xf32>
    %18 = arith.maximumf %16, %17 : vector<1x512xf32>
    %19 = vector.broadcast %12 : vector<1x512xf32> to vector<64x512xf32>
    %20 = arith.subf %5, %19 : vector<64x512xf32>
    %cst_10 = arith.constant 9.99999974E-6 : f32
    %21 = vector.broadcast %cst_10 : f32 to vector<1x512xf32>
    %22 = arith.addf %18, %21 : vector<1x512xf32>
    %23 = math.rsqrt %22 : vector<1x512xf32>
    %24 = vector.broadcast %23 : vector<1x512xf32> to vector<64x512xf32>
    %25 = arith.mulf %20, %24 : vector<64x512xf32>
    %c0_11 = arith.constant 0 : index
    %c0_12 = arith.constant 0 : index
    %26 = vector.load %arg5[%c0_11, %c0_12] : memref<1x512xf32, #tpu.memory_space<vmem>>, vector<1x512xf32>
    %27 = vector.broadcast %26 : vector<1x512xf32> to vector<64x512xf32>
    %28 = arith.mulf %25, %27 : vector<64x512xf32>
    %c0_13 = arith.constant 0 : index
    %c0_14 = arith.constant 0 : index
    %29 = vector.load %arg6[%c0_13, %c0_14] : memref<1x512xf32, #tpu.memory_space<vmem>>, vector<1x512xf32>
    %30 = vector.broadcast %29 : vector<1x512xf32> to vector<64x512xf32>
    %31 = arith.addf %28, %30 : vector<64x512xf32>
    %32 = tpu.iota {dimensions = array<i32: 0>} : vector<64x512xi32>
    %33 = tpu.iota {dimensions = array<i32: 1>} : vector<64x512xi32>
    %c512_i32 = arith.constant 512 : i32
    %34 = arith.muli %arg0, %c512_i32 : i32
    %35 = vector.broadcast %34 : i32 to vector<64x512xi32>
    %36 = arith.addi %33, %35 : vector<64x512xi32>
    %c0_15 = arith.constant 0 : index
    %37 = memref.load %arg1[%c0_15] : memref<1xi32, #tpu.memory_space<smem>>
    %c-1640531535_i32 = arith.constant -1640531535 : i32
    %38 = vector.broadcast %c-1640531535_i32 : i32 to vector<64x512xi32>
    %39 = arith.muli %32, %38 : vector<64x512xi32>
    %40 = vector.broadcast %37 : i32 to vector<64x512xi32>
    %41 = arith.addi %40, %39 : vector<64x512xi32>
    %c-2048144777_i32 = arith.constant -2048144777 : i32
    %42 = vector.broadcast %c-2048144777_i32 : i32 to vector<64x512xi32>
    %43 = arith.muli %36, %42 : vector<64x512xi32>
    %44 = arith.addi %41, %43 : vector<64x512xi32>
    %c16_i32 = arith.constant 16 : i32
    %45 = vector.broadcast %c16_i32 : i32 to vector<64x512xi32>
    %46 = arith.shrui %44, %45 : vector<64x512xi32>
    %47 = arith.xori %44, %46 : vector<64x512xi32>
    %c-2048144789_i32 = arith.constant -2048144789 : i32
    %48 = vector.broadcast %c-2048144789_i32 : i32 to vector<64x512xi32>
    %49 = arith.muli %47, %48 : vector<64x512xi32>
    %c13_i32 = arith.constant 13 : i32
    %50 = vector.broadcast %c13_i32 : i32 to vector<64x512xi32>
    %51 = arith.shrui %49, %50 : vector<64x512xi32>
    %52 = arith.xori %49, %51 : vector<64x512xi32>
    %c-1028477387_i32 = arith.constant -1028477387 : i32
    %53 = vector.broadcast %c-1028477387_i32 : i32 to vector<64x512xi32>
    %54 = arith.muli %52, %53 : vector<64x512xi32>
    %c16_i32_16 = arith.constant 16 : i32
    %55 = vector.broadcast %c16_i32_16 : i32 to vector<64x512xi32>
    %56 = arith.shrui %54, %55 : vector<64x512xi32>
    %57 = arith.xori %54, %56 : vector<64x512xi32>
    %c429496729_i32 = arith.constant 429496729 : i32
    %58 = vector.broadcast %c429496729_i32 : i32 to vector<64x512xi32>
    %59 = arith.cmpi uge, %57, %58 : vector<64x512xi32>
    %cst_17 = arith.constant 1.11111116 : f32
    %60 = vector.broadcast %cst_17 : f32 to vector<64x512xf32>
    %61 = arith.mulf %31, %60 : vector<64x512xf32>
    %cst_18 = arith.constant 0.000000e+00 : f32
    %62 = vector.broadcast %cst_18 : f32 to vector<64x512xf32>
    %63 = arith.select %59, %61, %62 : vector<64x512xi1>, vector<64x512xf32>
    %c0_19 = arith.constant 0 : index
    %c0_20 = arith.constant 0 : index
    %64 = vector.load %arg7[%c0_19, %c0_20] : memref<64x512xf32, #tpu.memory_space<vmem>>, vector<64x512xf32>
    tpu.vector_store %arg7[%c0_19, %c0_20], %63 {strides = array<i32>} : memref<64x512xf32, #tpu.memory_space<vmem>>, vector<64x512xf32>,
    return
  }
  func.func @transform_0(%arg0: i32) -> i32 {
    %c0_i32 = arith.constant 0 : i32
    %c0_i32_0 = arith.constant 0 : i32
    return %c0_i32 : i32
  }
  func.func @transform_1(%arg0: i32) -> (i32, i32) {
    %c0_i32 = arith.constant 0 : i32
    %c0_i32_0 = arith.constant 0 : i32
    %c0_i32_1 = arith.constant 0 : i32
    return %c0_i32, %c0_i32_0 : i32, i32
  }
  func.func @transform_2(%arg0: i32) -> (i32, i32) {
    %c0_i32 = arith.constant 0 : i32
    %c0_i32_0 = arith.constant 0 : i32
    return %arg0, %c0_i32 : i32, i32
  }
  func.func @transform_3(%arg0: i32) -> (i32, i32) {
    %c0_i32 = arith.constant 0 : i32
    %c0_i32_0 = arith.constant 0 : i32
    return %c0_i32, %arg0 : i32, i32
  }
  func.func @transform_4(%arg0: i32) -> (i32, i32) {
    %c0_i32 = arith.constant 0 : i32
    %c0_i32_0 = arith.constant 0 : i32
    return %c0_i32, %arg0 : i32, i32
  }
  func.func @transform_5(%arg0: i32) -> (i32, i32) {
    %c0_i32 = arith.constant 0 : i32
    %c0_i32_0 = arith.constant 0 : i32
    return %c0_i32, %arg0 : i32, i32
  }
  func.func @transform_6(%arg0: i32) -> (i32, i32) {
    %c0_i32 = arith.constant 0 : i32
    %c0_i32_0 = arith.constant 0 : i32
    return %c0_i32, %arg0 : i32, i32
  }
}

</mosaic_0001>

<bundles_post_ra>
// kernel: tpu_custom_call.1
= control target key start
LH: loop header
LB: loop body
LE: loop exit
PB: predicated region body
PF: predicated region fallthrough
CT: control target
= control target key end

     0   :  { %s3229_s0 = inlined_call_operand.<no memory space> [shape: s32[1], index: 0, kind: input, shape index: {}]   ;;  %s3230_s1 = inlined_call_operand.vmem [shape: bf16[64,32], index: 1, kind: input, shape index: {}]   ;;  %s3231_s2 = inlined_call_operand.vmem [shape: bf16[1024,32], index: 2, kind: input, shape index: {}]   ;;  %s3232_s3 = inlined_call_operand.vmem [shape: f32[1,1024], index: 3, kind: input, shape index: {}]   ;;  %s3233_s4 = inlined_call_operand.vmem [shape: f32[1,1024], index: 4, kind: input, shape index: {}]   ;;  %s3234_s5 = inlined_call_operand.vmem [shape: f32[1,1024], index: 5, kind: input, shape index: {}]   ;;  %s3235_s6 = inlined_call_operand.hbm [shape: f32[64,1024], index: 6, kind: output, shape index: {}]  }
   0x1   :  { %11 = sst [smem:[#allocation2]] %s3229_s0 }
   0x2   :  { %12 = vsyncpa [#allocation4], 0 }
   0x3   :  { %14 = vsyncpa [#allocation4 + $0x1], 0  ;;  %s2058_s23 = smov 0   ;;  %s2060_s24 = smov 0  }
   0x4   :  { %s2062_s25 = smov 0   ;;  %s2064_s26 = smov 0  }
   0x5 LB: > { %s2079_s0 = sadd.s32 4294967295, %s2014_s26   ;;  %s1739_s27 = sadd.s32 4294967294, %s2014_s26   ;;  %s2014_s26 = sphi %s2064_s26, %s3493_s26   ;;  %s2010_s25 = sphi %s2062_s25, %s3492_s25   ;;  %s2006_s24 = sphi %s2060_s24, %s3491_s24   ;;  %s2002_s23 = sphi %s2058_s23, %s3490_s23  }
   0x6   : > { %s2083_s28 = sadd.s32 1, %s2014_s26   ;;  %s173_s29 = sadd.s32 1, %s2010_s25 }
   0x7   : > { %s170_s30 = ssub.s32 %s2014_s26, %s2083_s28  ;;  %p183_p0 = scmp.ne.s32.totalorder %s2010_s25, %s2006_s24 }
   0x8   : > { %p171_p1 = scmp.eq.s32.totalorder %s170_s30, 0  ;;  %p184_p2 = scmp.eq.s32.totalorder %s2079_s0, 1 }
   0x9   : > { %p189_p3 = scmp.ne.s32.totalorder %s2006_s24, %s2002_s23  ;;  %p190_p4 = scmp.eq.s32.totalorder %s1739_s27, 1 }
   0xa   : > { %s2094_s7 = scalar_select %p171_p1, %s2010_s25, %s173_s29  }
   0xb   : > { %p2096_p5 = por %p184_p2, %p183_p0  ;;  %p2100_p6 = por %p190_p4, %p189_p3 }
   0xc   : > { %p1742_p7 = scmp.ge.s32.totalorder %s2014_s26, 1  ;;  %p247_p8 = scmp.lt.s32.totalorder %s2014_s26, 3 }
   0xe   : > { %p248_p9 = pnand %p1742_p7, %p247_p8 }
  0x10   : > { %251 = sbr.rel (%p248_p9) target bundleno = 457 (0x1c9), region = 44 }
  0x17   : > { %s1744_s10 = sshll.u32 %s2079_s0, 6  ;;  %v2110_v0 = vld [vmem:[%s3230_s1] sm:$0xff]   ;;  %vm586_vm0 = vcmask 261120   ;;  %v1939_v49 = vld [vmem:[%s3230_s1 + $0x8] sm:$0xff]   ;;  %v1940_v50 = vld [vmem:[%s3230_s1 + $0x10] sm:$0xff]   ;;  %v386_v52 = vlaneseq  ;;  %s1198_s27 = sld [smem:[#allocation2]] }
  0x18   : > { %p290_p10 = scmp.lt.s32.totalorder %s1744_s10, 127  ;;  %1816 = vmatprep.mubr.msk.bf16.mxu0 %vm586_vm0, %v2110_v0  ;;  %1840 = vmatprep.mubr.msk.bf16.mxu1 %vm586_vm0, %v2110_v0  ;;  %v1941_v51 = vld [vmem:[%s3230_s1 + $0x18] sm:$0xff]   ;;  %s1793_s29 = sshll.u32 %s2079_s0, 9 }
  0x19   : > { %v2210_v53 = vshrl.u32 %v386_v52, 7  ;;  %v2214_v56 = vand.u32 127, %v386_v52  ;;  %v2221_v59 = vstv %s1793_s29  ;;  %s1746_s30 = sshll.u32 %s2079_s0, 2  ;;  %s286_s19 = sand.u32 1, %s2006_s24  }
  0x1a   : > { %s3495_s10 = smov (!%p290_p10, %s1744_s10), 127  ;;  %p296_p11 = scmp.lt.s32.totalorder %s1746_s30, 7 }
  0x1b   : > { %s1745_s13 = sshll.u32 %s3495_s10, 2  ;;  %v1180_v54 = vadd.s32 8, %v2210_v53  ;;  %v1181_v55 = vadd.s32 16, %v2210_v53  ;;  %v1182_v57 = vadd.s32 24, %v2210_v53  ;;  %v1183_v58 = vadd.s32 32, %v2210_v53  ;;  %s2906_s20 = sshll.u32 %s286_s19, 8 }
  0x1c   : > { %s2119_s16 = scalar_lea.vmem %s3231_s2, %s1745_s13  ;;  %v1184_v60 = vadd.s32 40, %v2210_v53  ;;  %v1194_v61 = vadd.s32 %v2221_v59, %v2214_v56  ;;  %v1199_v62 = vmul.u32 2654435761, %v2210_v53  ;;  %s3497_s30 = smov (!%p296_p11, %s1746_s30), 7  ;;  %v2286_v52 = vsub.s32 3, %v2210_v53 }
  0x1d   : > { %v1906_v1 = vld [vmem:[%s2119_s16 + $0x40] sm:$0xff]   ;;  %v1910_v6 = vld [vmem:[%s2119_s16 + $0x48] sm:$0xff]   ;;  %v1914_v12 = vld [vmem:[%s2119_s16 + $0x50] sm:$0xff]   ;;  %v1200_v63 = vmul.u32 2654435761, %v1180_v54  ;;  %s298_s12 = scalar_lea.vmem %s3232_s3, %s3497_s30  ;;  %s2262_s15 = scalar_lea.vmem %s3234_s5, %s3497_s30 }
  0x1e   : > { %v1907_v2 = vld [vmem:[%s2119_s16 + $0xc0] sm:$0xff]   ;;  %1848 = vmatprep.subr.msk.bf16.mxu0 %vm586_vm0, %v1906_v1  ;;  %v1911_v8 = vld [vmem:[%s2119_s16 + $0xc8] sm:$0xff]   ;;  %v1915_v14 = vld [vmem:[%s2119_s16 + $0xd0] sm:$0xff]   ;;  %v1186_v1 = vadd.s32 56, %v2210_v53  ;;  %s2272_s18 = scalar_lea.vmem %s3233_s4, %s3497_s30  ;;  %3306 = vst [vmem:[#allocation6_spill] sm:$0xff] %v2286_v52  ;;  %s2951_s21 = scalar_lea.vmem [#allocation3], %s2906_s20 }
  0x1f   : > { %v1908_v3 = vld [vmem:[%s2119_s16] sm:$0xff]   ;;  %1856 = vmatprep.subr.msk.bf16.mxu1 %vm586_vm0, %v1907_v2  ;;  %v1912_v9 = vld [vmem:[%s2119_s16 + $0x8] sm:$0xff]   ;;  %v1916_v15 = vld [vmem:[%s2119_s16 + $0x10] sm:$0xff]   ;;  %v1201_v2 = vmul.u32 2654435761, %v1181_v55  ;;  %s1650_s22 = sshll.u32 %s2951_s21, 4  ;;  %s3166_s10 = scalar_lea.hbm %s3235_s6, %s1793_s29  ;;  %s3170_s22 = int_to_ptr.vmem [resolvable:$true] %s1650_s22 }
  0x20   : > { %v1909_v4 = vld [vmem:[%s2119_s16 + $0x80] sm:$0xff]   ;;  %v600_v5 = vsel %vm586_vm0, %v1908_v3, 0  ;;  %v1913_v10 = vld [vmem:[%s2119_s16 + $0x88] sm:$0xff]   ;;  %v603_v11 = vsel %vm586_vm0, %v1912_v9, 0  ;;  %v1917_v16 = vld [vmem:[%s2119_s16 + $0x90] sm:$0xff]   ;;  %v606_v17 = vsel %vm586_vm0, %v1916_v15, 0  ;;  %v1207_v3 = vstv %s1198_s27 }
  0x21   : > { %1801 = vmatpush3.bf16.xpose.msra.mxu0 %v600_v5  ;;  %v648_v7 = vsel %vm586_vm0, %v1909_v4, 0  ;;  %v651_v13 = vsel %vm586_vm0, %v1913_v10, 0  ;;  %v1918_v18 = vld [vmem:[%s2119_s16 + $0x58] sm:$0xff]   ;;  %v654_v19 = vsel %vm586_vm0, %v1917_v16, 0  ;;  %v1922_v24 = vld [vmem:[%s2119_s16 + $0x60] sm:$0xff]   ;;  %v1926_v30 = vld [vmem:[%s2119_s16 + $0x68] sm:$0xff]   ;;  %v2229_v4 = vadd.s32 %v1207_v3, %v1199_v62 }
  0x22   : > { %1825 = vmatpush3.bf16.xpose.msra.mxu1 %v648_v7  ;;  %1849 = vmatprep.subr.msk.bf16.mxu0 %vm586_vm0, %v1910_v6  ;;  %v1919_v20 = vld [vmem:[%s2119_s16 + $0xd8] sm:$0xff]   ;;  %v1923_v26 = vld [vmem:[%s2119_s16 + $0xe0] sm:$0xff]   ;;  %v1927_v32 = vld [vmem:[%s2119_s16 + $0xe8] sm:$0xff]   ;;  %v2231_v5 = vadd.s32 %v1207_v3, %v1200_v63  ;;  %v1202_v6 = vmul.u32 2654435761, %v1182_v57  ;;  %s3188_s0 = scalar_lea.sflag [#allocation4], %s286_s19 }
  0x23   : > { %1857 = vmatprep.subr.msk.bf16.mxu1 %vm586_vm0, %v1911_v8  ;;  %v1920_v21 = vld [vmem:[%s2119_s16 + $0x18] sm:$0xff]   ;;  %v1924_v27 = vld [vmem:[%s2119_s16 + $0x20] sm:$0xff]   ;;  %v1928_v33 = vld [vmem:[%s2119_s16 + $0x28] sm:$0xff]   ;;  %v1203_v7 = vmul.u32 2654435761, %v1183_v58  ;;  %v2233_v8 = vadd.s32 %v1207_v3, %v1201_v2  ;;  %s1952_s29 = scalar_lea.vmem %s3170_s22, 4096 }
  0x24   : > { %v1921_v22 = vld [vmem:[%s2119_s16 + $0x98] sm:$0xff]   ;;  %v609_v23 = vsel %vm586_vm0, %v1920_v21, 0  ;;  %v1925_v28 = vld [vmem:[%s2119_s16 + $0xa0] sm:$0xff]   ;;  %v612_v29 = vsel %vm586_vm0, %v1924_v27, 0  ;;  %v1929_v34 = vld [vmem:[%s2119_s16 + $0xa8] sm:$0xff]   ;;  %v615_v35 = vsel %vm586_vm0, %v1928_v33, 0  ;;  %v2238_v16 = vadd.s32 %v1207_v3, %v1202_v6  ;;  %p1953_p12 = scmp.ne.s32.totalorder %s3170_s22, %s1952_s29 }
  0x25   : > { %v657_v25 = vsel %vm586_vm0, %v1921_v22, 0  ;;  %v660_v31 = vsel %vm586_vm0, %v1925_v28, 0  ;;  %v1930_v36 = vld [vmem:[%s2119_s16 + $0x70] sm:$0xff]   ;;  %v663_v37 = vsel %vm586_vm0, %v1929_v34, 0  ;;  %v1934_v42 = vld [vmem:[%s2119_s16 + $0x78] sm:$0xff]   ;;  %s2016_s11 = smov [#allocation3]  }
  0x26   : > { %v1931_v38 = vld [vmem:[%s2119_s16 + $0xf0] sm:$0xff]   ;;  %v1935_v44 = vld [vmem:[%s2119_s16 + $0xf8] sm:$0xff]   ;;  %v1204_v9 = vmul.u32 2654435761, %v1184_v60  ;;  %v1216_v10 = vmul.u32 2246822519, %v1194_v61  ;;  %p1954_p13 = pnand %p1953_p12, %p2096_p5 }
  0x27   : > { %v1932_v39 = vld [vmem:[%s2119_s16 + $0x30] sm:$0xff]   ;;  %v1936_v45 = vld [vmem:[%s2119_s16 + $0x38] sm:$0xff]   ;;  %v384_v54 = vld [vmem:[%s298_s12] sm:$0xf]  ;;  %s1956_s12 = sshll.u32 %s2016_s11, 4  ;;  %s1957_s12 = int_to_ptr.vmem [resolvable:$false] %s1956_s12 }
  0x28   : > { %v1933_v40 = vld [vmem:[%s2119_s16 + $0xb0] sm:$0xff]   ;;  %v618_v41 = vsel %vm586_vm0, %v1932_v39, 0  ;;  %v1937_v46 = vld [vmem:[%s2119_s16 + $0xb8] sm:$0xff]   ;;  %v621_v47 = vsel %vm586_vm0, %v1936_v45, 0  ;;  %v1228_v15 = vadd.s32 %v1216_v10, %v2233_v8  ;;  %v1124_v55 = vld [vmem:[%s2262_s15] sm:$0xf]  ;;  %p1955_p0 = pneg %p1954_p13  ;;  %p1959_p1 = scmp.lt.s32.totalorder %s3170_s22, %s1957_s12 }
  0x29   : > { %1803 = vmatpush3.bf16.xpose.msra.mxu0 %v603_v11  ;;  %v666_v43 = vsel %vm586_vm0, %v1933_v40, 0  ;;  %v669_v48 = vsel %vm586_vm0, %v1937_v46, 0  ;;  %v2291_v58 = vld [vmem:[%s2272_s18] sm:$0xf]  ;;  %s1958_s13 = scalar_lea.vmem %s1957_s12, 8192 }
  0x2a   : > { %1827 = vmatpush3.bf16.xpose.msra.mxu1 %v651_v13  ;;  %1850 = vmatprep.subr.msk.bf16.mxu0 %vm586_vm0, %v1914_v12  ;;  %v1206_v12 = vmul.u32 2654435761, %v1186_v1  ;;  %v1220_v13 = vadd.s32 %v1216_v10, %v2229_v4  ;;  %p1960_p2 = scmp.lt.s32.totalorder %s1958_s13, %s1952_s29 }
  0x2b   : > { %1858 = vmatprep.subr.msk.bf16.mxu1 %vm586_vm0, %v1915_v14  ;;  %v1224_v14 = vadd.s32 %v1216_v10, %v2231_v5 }
  0x2c   : > { %v2247_v21 = vadd.s32 %v1207_v3, %v1206_v12  ;;  %p1961_p3 = por %p1960_p2, %p1959_p1 }
  0x2d   : > { %v1256_v22 = vshrl.u32 %v1224_v14, 16 }
  0x2e   : > { %p1962_p4 = pnand %p1961_p3, %p1955_p0 }
  0x31   : > { %1805 = vmatpush3.bf16.xpose.msra.mxu0 %v606_v17  ;;  %v2240_v17 = vadd.s32 %v1207_v3, %v1203_v7 }
  0x32   : > { %1829 = vmatpush3.bf16.xpose.msra.mxu1 %v654_v19  ;;  %1851 = vmatprep.subr.msk.bf16.mxu0 %vm586_vm0, %v1918_v18  ;;  %v2242_v18 = vadd.s32 %v1207_v3, %v1204_v9  ;;  %v1252_v19 = vshrl.u32 %v1220_v13, 16  ;;  %v2313_v9 = vrot.slane %v384_v54, %v2286_v52 }
  0x33   : > { %1859 = vmatprep.subr.msk.bf16.mxu1 %vm586_vm0, %v1919_v20 }
  0x34   : > { %v1284_v27 = vxor.u32 %v1252_v19, %v1220_v13  ;;  %3309 = vst [vmem:[#allocation9_spill] sm:$0xff] %v2313_v9 }
  0x39   : > { %1807 = vmatpush3.bf16.xpose.msra.mxu0 %v609_v23  ;;  %v1260_v23 = vshrl.u32 %v1228_v15, 16 }
  0x3a   : > { %1831 = vmatpush3.bf16.xpose.msra.mxu1 %v657_v25  ;;  %1852 = vmatprep.subr.msk.bf16.mxu0 %vm586_vm0, %v1922_v24  ;;  %v1232_v24 = vadd.s32 %v1216_v10, %v2238_v16  ;;  %v1236_v25 = vadd.s32 %v1216_v10, %v2240_v17 }
  0x3b   : > { %1860 = vmatprep.subr.msk.bf16.mxu1 %vm586_vm0, %v1923_v26  ;;  %v1240_v26 = vadd.s32 %v1216_v10, %v2242_v18 }
  0x3c   : > { %v1268_v33 = vshrl.u32 %v1236_v25, 16 }
  0x3d   : > { %v1272_v34 = vshrl.u32 %v1240_v26, 16 }
  0x41   : > { %1809 = vmatpush3.bf16.xpose.msra.mxu0 %v612_v29  ;;  %v1248_v29 = vadd.s32 %v1216_v10, %v2247_v21 }
  0x42   : > { %1833 = vmatpush3.bf16.xpose.msra.mxu1 %v660_v31  ;;  %1853 = vmatprep.subr.msk.bf16.mxu0 %vm586_vm0, %v1926_v30  ;;  %v1288_v30 = vxor.u32 %v1256_v22, %v1224_v14  ;;  %v1292_v31 = vxor.u32 %v1260_v23, %v1228_v15 }
  0x43   : > { %1861 = vmatprep.subr.msk.bf16.mxu1 %vm586_vm0, %v1927_v32  ;;  %v1264_v32 = vshrl.u32 %v1232_v24, 16 }
  0x44   : > { %v1324_v39 = vmul.u32 2246822507, %v1292_v31 }
  0x45   : > { %v2254_v40 = vxor.u32 %v1264_v32, %v1232_v24 }
  0x47   : > { %v1328_v57 = vmul.u32 2246822507, %v2254_v40 }
  0x49   : > { %1811 = vmatpush3.bf16.xpose.msra.mxu0 %v615_v35  ;;  %v1316_v35 = vmul.u32 2246822507, %v1284_v27  ;;  %v1360_v13 = vshrl.u32 %v1328_v57, 13 }
  0x4a   : > { %1835 = vmatpush3.bf16.xpose.msra.mxu1 %v663_v37  ;;  %1854 = vmatprep.subr.msk.bf16.mxu0 %vm586_vm0, %v1930_v36  ;;  %v1280_v37 = vshrl.u32 %v1248_v29, 16 }
  0x4b   : > { %1862 = vmatprep.subr.msk.bf16.mxu1 %vm586_vm0, %v1931_v38  ;;  %v1320_v38 = vmul.u32 2246822507, %v1288_v30 }
  0x4c   : > { %v2276_v46 = vxor.u32 %v1280_v37, %v1248_v29 }
  0x4e   : > { %v1344_v1 = vmul.u32 2246822507, %v2276_v46 }
  0x50   : > { %v1376_v24 = vshrl.u32 %v1344_v1, 13 }
  0x51   : > { %1813 = vmatpush3.bf16.xpose.msra.mxu0 %v618_v41  ;;  %v2264_v41 = vxor.u32 %v1268_v33, %v1236_v25 }
  0x52   : > { %1837 = vmatpush3.bf16.xpose.msra.mxu1 %v666_v43  ;;  %1855 = vmatprep.subr.msk.bf16.mxu0 %vm586_vm0, %v1934_v42  ;;  %v2266_v42 = vxor.u32 %v1272_v34, %v1240_v26  ;;  %v1348_v43 = vshrl.u32 %v1316_v35, 13  ;;  %v1392_v26 = vxor.u32 %v1360_v13, %v1328_v57 }
  0x53   : > { %1863 = vmatprep.subr.msk.bf16.mxu1 %vm586_vm0, %v1935_v44  ;;  %v1190_v44 = vadd.s32 256, %v2214_v56  ;;  %v1332_v60 = vmul.u32 2246822507, %v2264_v41 }
  0x54   : > { %v1336_v61 = vmul.u32 2246822507, %v2266_v42  ;;  %v2295_v62 = vxor.u32 %v1348_v43, %v1316_v35 }
  0x55   : > { %v1196_v63 = vadd.s32 %v2221_v59, %v1190_v44  ;;  %v1364_v14 = vshrl.u32 %v1332_v60, 13 }
  0x56   : > { %v1368_v15 = vshrl.u32 %v1336_v61, 13 }
  0x57   : > { %v1218_v22 = vmul.u32 2246822519, %v1196_v63  ;;  %v1396_v25 = vxor.u32 %v1364_v14, %v1332_v60 }
  0x59   : > { %1815 = vmatpush3.bf16.xpose.msra.mxu0 %v621_v47  ;;  %v1352_v47 = vshrl.u32 %v1320_v38, 13  ;;  %v1222_v27 = vadd.s32 %v1218_v22, %v2229_v4  ;;  %v1230_v29 = vadd.s32 %v1218_v22, %v2233_v8  ;;  %v1234_v30 = vadd.s32 %v1218_v22, %v2238_v16 }
  0x5a   : > { %1839 = vmatpush3.bf16.xpose.msra.mxu1 %v669_v48  ;;  %v1356_v48 = vshrl.u32 %v1324_v39, 13  ;;  %v1238_v31 = vadd.s32 %v1218_v22, %v2240_v17  ;;  %v1242_v32 = vadd.s32 %v1218_v22, %v2242_v18  ;;  %v1250_v34 = vadd.s32 %v1218_v22, %v2247_v21 }
  0x5b   : > { %v1254_v35 = vshrl.u32 %v1222_v27, 16  ;;  %v1262_v37 = vshrl.u32 %v1230_v29, 16 }
  0x5c   : > { %v2302_v2 = vxor.u32 %v1356_v48, %v1324_v39  ;;  %v1270_v39 = vshrl.u32 %v1238_v31, 16  ;;  %v1274_v40 = vshrl.u32 %v1242_v32, 16  ;;  %v1282_v42 = vshrl.u32 %v1250_v34, 16 }
  0x5d   : > { %v1286_v43 = vxor.u32 %v1254_v35, %v1222_v27 }
  0x5e   : > { %v1306_v48 = vxor.u32 %v1274_v40, %v1242_v32  ;;  %v1314_v63 = vxor.u32 %v1282_v42, %v1250_v34  ;;  %v1424_v32 = vmul.u32 3266489909, %v1392_v26  ;;  %v3316_v34 = vmul.u32 3266489909, %v2302_v2 }
  0x5f   : > { %v1318_v19 = vmul.u32 2246822507, %v1286_v43 }
  0x60   : > { %1817 = vmatmul.mubr.msk.bf16.vlgmr.msra.gmra.mrb[0].mxu0 %vm586_vm0, %v2110_v0  ;;  %v1338_v27 = vmul.u32 2246822507, %v1306_v48  ;;  %v1452_v35 = vshrl.u32 %v3316_v34, 16 }
  0x61   : > { %1841 = vmatmul.mubr.msk.bf16.vlgmr.msra.gmra.mrb[0].mxu1 %vm586_vm0, %v2110_v0  ;;  %1818 = vmatprep.mubr.msk.bf16.mxu0 %vm586_vm0, %v1939_v49  ;;  %v1185_v0 = vadd.s32 48, %v2210_v53 }
  0x62   : > { %1842 = vmatprep.mubr.msk.bf16.mxu1 %vm586_vm0, %v1939_v49 }
  0x63   : > { %v1205_v11 = vmul.u32 2654435761, %v1185_v0 }
  0x65   : > { %v2245_v20 = vadd.s32 %v1207_v3, %v1205_v11 }
  0x67   : > { %v1244_v28 = vadd.s32 %v1216_v10, %v2245_v20  ;;  %v1246_v33 = vadd.s32 %v1218_v22, %v2245_v20 }
  0x68   : > { %1819 = vmatmul.mubr.msk.bf16.gmra.mrb[4].mxu0 %vm586_vm0, %v1939_v49 }
  0x69   : > { %1843 = vmatmul.mubr.msk.bf16.gmra.mrb[4].mxu1 %vm586_vm0, %v1939_v49  ;;  %1820 = vmatprep.mubr.msk.bf16.mxu0 %vm586_vm0, %v1940_v50  ;;  %v1276_v36 = vshrl.u32 %v1244_v28, 16  ;;  %v388_v49 = vsub.s32 0, %v2210_v53  ;;  %v1278_v41 = vshrl.u32 %v1246_v33, 16 }
  0x6a   : > { %1844 = vmatprep.mubr.msk.bf16.mxu1 %vm586_vm0, %v1940_v50 }
  0x6b   : > { %v2274_v45 = vxor.u32 %v1276_v36, %v1244_v28  ;;  %v2304_v3 = vrot.slane %v384_v54, %v388_v49  ;;  %v2322_v12 = vrot.slane %v2291_v58, %v388_v49  ;;  %v1226_v28 = vadd.s32 %v1218_v22, %v2231_v5 }
  0x6c   : > { %v2335_v52 = vrot.slane %v1124_v55, %v388_v49  ;;  %v3314_v49 = vmul.u32 3266489909, %v2295_v62 }
  0x6d   : > { %v1340_v0 = vmul.u32 2246822507, %v2274_v45  ;;  %3312 = vst [vmem:[#allocation12_spill] sm:$0xff] %v2322_v12  ;;  %v1258_v36 = vshrl.u32 %v1226_v28, 16  ;;  %v1294_v45 = vxor.u32 %v1262_v37, %v1230_v29  ;;  %v1346_v29 = vmul.u32 2246822507, %v1314_v63 }
  0x6e   : > { %3313 = vst [vmem:[#allocation13_spill] sm:$0xff] %v2335_v52  ;;  %v1456_v37 = vshrl.u32 %v1424_v32, 16 }
  0x6f   : > { %v1372_v23 = vshrl.u32 %v1340_v0, 13  ;;  %v1290_v44 = vxor.u32 %v1258_v36, %v1226_v28  ;;  %v1378_v26 = vshrl.u32 %v1346_v29, 13 }
  0x70   : > { %1821 = vmatmul.mubr.msk.bf16.gmra.mrb[8].mxu0 %vm586_vm0, %v1940_v50 }
  0x71   : > { %1845 = vmatmul.mubr.msk.bf16.gmra.mrb[8].mxu1 %vm586_vm0, %v1940_v50  ;;  %1822 = vmatprep.mubr.msk.bf16.mxu0 %vm586_vm0, %v1941_v51  ;;  %v2280_v50 = vsub.s32 2, %v2210_v53  ;;  %v1322_v22 = vmul.u32 2246822507, %v1290_v44  ;;  %v1404_v9 = vxor.u32 %v1372_v23, %v1340_v0  ;;  %v2367_v48 = vxor.u32 %v1378_v26, %v1346_v29 }
  0x72   : > { %1846 = vmatprep.mubr.msk.bf16.mxu1 %vm586_vm0, %v1941_v51 }
  0x73   : > { %v2307_v6 = vrot.slane %v384_v54, %v2280_v50  ;;  %v2316_v10 = vrot.slane %v1124_v55, %v2280_v50  ;;  %v1354_v57 = vshrl.u32 %v1322_v22, 13 }
  0x75   : > { %3307 = vst [vmem:[#allocation7_spill] sm:$0xff] %v2307_v6  ;;  %3310 = vst [vmem:[#allocation10_spill] sm:$0xff] %v2316_v10  ;;  %v1326_v10 = vmul.u32 2246822507, %v1294_v45 }
  0x77   : > { %v1358_v60 = vshrl.u32 %v1326_v10, 13 }
  0x78   : > { %1823 = vmatmul.mubr.msk.bf16.gmra.mrb[12].mxu0 %vm586_vm0, %v1941_v51 }
  0x79   : > { %1847 = vmatmul.mubr.msk.bf16.gmra.mrb[12].mxu1 %vm586_vm0, %v1941_v51  ;;  %v2283_v51 = vsub.s32 1, %v2210_v53  ;;  %v2300_v53 = vxor.u32 %v1352_v47, %v1320_v38  ;;  %v1266_v38 = vshrl.u32 %v1234_v30, 16  ;;  %v1302_v47 = vxor.u32 %v1270_v39, %v1238_v31 }
  0x7a   : > { %v1189_v31 = vadd.s32 128, %v2214_v56  ;;  %v2348_v39 = vxor.u32 %v1358_v60, %v1326_v10 }
  0x7b   : > { %v2310_v7 = vrot.slane %v384_v54, %v2283_v51  ;;  %v2319_v11 = vrot.slane %v1124_v55, %v2283_v51  ;;  %v1298_v46 = vxor.u32 %v1266_v38, %v1234_v30  ;;  %v1310_v54 = vxor.u32 %v1278_v41, %v1246_v33 }
  0x7c   : > { %v1334_v6 = vmul.u32 2246822507, %v1302_v47  ;;  %v1350_v30 = vshrl.u32 %v1318_v19, 13  ;;  %v1428_v33 = vmul.u32 3266489909, %v1396_v25  ;;  %v1444_v55 = vshrl.u32 %v3314_v49, 16 }
  0x7d   : > { %3308 = vst [vmem:[#allocation8_spill] sm:$0xff] %v2310_v7  ;;  %3311 = vst [vmem:[#allocation11_spill] sm:$0xff] %v2319_v11  ;;  %v1400_v11 = vxor.u32 %v1368_v15, %v1336_v61  ;;  %v1330_v12 = vmul.u32 2246822507, %v1298_v46  ;;  %v1408_v7 = vxor.u32 %v1376_v24, %v1344_v1  ;;  %v1342_v28 = vmul.u32 2246822507, %v1310_v54 }
  0x7e   : > { %v1366_v14 = vshrl.u32 %v1334_v6, 13  ;;  %v1436_v15 = vmul.u32 3266489909, %v1404_v9  ;;  %v3315_v1 = vmul.u32 3266489909, %v2300_v53  ;;  %v1370_v24 = vshrl.u32 %v1338_v27, 13 }
  0x7f   : > { %v1432_v13 = vmul.u32 3266489909, %v1400_v11  ;;  %v1362_v61 = vshrl.u32 %v1330_v12, 13  ;;  %v1440_v0 = vmul.u32 3266489909, %v1408_v7  ;;  %v1374_v36 = vshrl.u32 %v1342_v28, 13 }
  0x80   : > { %v1448_v23 = vshrl.u32 %v3315_v1, 16  ;;  %v2344_v25 = vxor.u32 %v1350_v30, %v1318_v19  ;;  %v1460_v11 = vshrl.u32 %v1428_v33, 16  ;;  %v2346_v38 = vxor.u32 %v1354_v57, %v1322_v22 }
  0x81   : > { %v1464_v40 = vshrl.u32 %v1432_v13, 16  ;;  %v3317_v7 = vmov %v3314_v49  ;;  %v2354_v41 = vxor.u32 %v1362_v61, %v1330_v12  ;;  %v2356_v42 = vxor.u32 %v1366_v14, %v1334_v6 }
  0x82   : > { %v2352_v9 = vxor.u32 %v1444_v55, %v3317_v7  ;;  %v1468_v43 = vshrl.u32 %v1436_v15, 16  ;;  %v1472_v44 = vshrl.u32 %v1440_v0, 16  ;;  %v2358_v45 = vxor.u32 %v1370_v24, %v1338_v27 }
  0x83   : > { %v1195_v19 = vadd.s32 %v2221_v59, %v1189_v31  ;;  %v3319_v46 = vmov %v3315_v1  ;;  %v2365_v10 = vxor.u32 %v1374_v36, %v1342_v28  ;;  %v3246_v62 = vmul.u32 3266489909, %v2344_v25 }
  0x84   : > { %3318 = vst [vmem:[#allocation14_spill] sm:$0xff] %v2352_v9  ;;  %v2363_v47 = vxor.u32 %v1448_v23, %v3319_v46  ;;  %v3321_v12 = vmov %v3316_v34  ;;  %v2374_v54 = vxor.u32 %v1456_v37, %v1424_v32  ;;  %v3244_v63 = vmul.u32 3266489909, %v2346_v38 }
  0x85   : > { %v2372_v6 = vxor.u32 %v1452_v35, %v3321_v12  ;;  %v3245_v22 = vmul.u32 3266489909, %v2348_v39  ;;  %v2378_v27 = vxor.u32 %v1460_v11, %v1428_v33  ;;  %v2380_v53 = vxor.u32 %v1464_v40, %v1432_v13 }
  0x86   : > { %3320 = vst [vmem:[#allocation15_spill] sm:$0xff] %v2363_v47  ;;  %3323 = vst [vmem:[#allocation17_spill] sm:$0xff] %v2374_v54  ;;  %v1426_v28 = vmul.u32 3266489909, %v2354_v41  ;;  %v1430_v29 = vmul.u32 3266489909, %v2356_v42  ;;  %v2384_v30 = vxor.u32 %v1468_v43, %v1436_v15  ;;  %v2386_v31 = vxor.u32 %v1472_v44, %v1440_v0 }
  0x87   : > { %3322 = vst [vmem:[#allocation16_spill] sm:$0xff] %v2372_v6  ;;  %3324 = vst [vmem:[#allocation18_spill] sm:$0xff] %v2378_v27  ;;  %v1217_v32 = vmul.u32 2246822519, %v1195_v19  ;;  %v2391_v57 = vrot.slane %v2291_v58, %v2280_v50  ;;  %v2397_v13 = vrot.slane %v2291_v58, %v2283_v51  ;;  %v1446_v12 = vshrl.u32 %v3246_v62, 16 }
  0x88   : > { %3325 = vst [vmem:[#allocation19_spill] sm:$0xff] %v2380_v53  ;;  %3326 = vst [vmem:[#allocation20_spill] sm:$0xff] %v2384_v30  ;;  %v1191_v33 = vadd.s32 384, %v2214_v56  ;;  %v1450_v2 = vshrl.u32 %v3244_v63, 16  ;;  %v1458_v62 = vshrl.u32 %v1426_v28, 16 }
  0x89   : > { %3327 = vst [vmem:[#allocation21_spill] sm:$0xff] %v2386_v31  ;;  %3328 = vst [vmem:[#allocation22_spill] sm:$0xff] %v2391_v57  ;;  %v1221_v49 = vadd.s32 %v1217_v32, %v2229_v4  ;;  %v1225_v55 = vadd.s32 %v1217_v32, %v2231_v5  ;;  %v1229_v61 = vadd.s32 %v1217_v32, %v2233_v8 }
  0x8a   : > { %3329 = vst [vmem:[#allocation23_spill] sm:$0xff] %v2397_v13  ;;  %v1233_v14 = vadd.s32 %v1217_v32, %v2238_v16  ;;  %v1237_v15 = vadd.s32 %v1217_v32, %v2240_v17  ;;  %v1241_v50 = vadd.s32 %v1217_v32, %v2242_v18  ;;  %v1245_v0 = vadd.s32 %v1217_v32, %v2245_v20 }
  0x8b   : > { %v1249_v1 = vadd.s32 %v1217_v32, %v2247_v21  ;;  %v1253_v23 = vshrl.u32 %v1221_v49, 16  ;;  %v1257_v24 = vshrl.u32 %v1225_v55, 16  ;;  %v1261_v51 = vshrl.u32 %v1229_v61, 16 }
  0x8c   : > { %v1265_v58 = vshrl.u32 %v1233_v14, 16  ;;  %v1269_v34 = vshrl.u32 %v1237_v15, 16  ;;  %v1273_v35 = vshrl.u32 %v1241_v50, 16  ;;  %v1277_v36 = vshrl.u32 %v1245_v0, 16 }
  0x8d   : > { %v1281_v26 = vshrl.u32 %v1249_v1, 16  ;;  %v1285_v37 = vxor.u32 %v1253_v23, %v1221_v49  ;;  %v1289_v11 = vxor.u32 %v1257_v24, %v1225_v55  ;;  %v1293_v40 = vxor.u32 %v1261_v51, %v1229_v61 }
  0x8e   : > { %v1297_v7 = vxor.u32 %v1265_v58, %v1233_v14  ;;  %v1301_v43 = vxor.u32 %v1269_v34, %v1237_v15  ;;  %v1305_v44 = vxor.u32 %v1273_v35, %v1241_v50  ;;  %v1309_v19 = vxor.u32 %v1277_v36, %v1245_v0 }
  0x8f   : > { %v1313_v46 = vxor.u32 %v1281_v26, %v1249_v1  ;;  %v1317_v32 = vmul.u32 2246822507, %v1285_v37  ;;  %v1321_v60 = vmul.u32 2246822507, %v1289_v11  ;;  %v1454_v49 = vshrl.u32 %v3245_v22, 16 }
  0x90   : > { %v1325_v55 = vmul.u32 2246822507, %v1293_v40  ;;  %v1329_v61 = vmul.u32 2246822507, %v1297_v7 }
  0x91   : > { %v1333_v14 = vmul.u32 2246822507, %v1301_v43  ;;  %v1337_v15 = vmul.u32 2246822507, %v1305_v44  ;;  %v1349_v50 = vshrl.u32 %v1317_v32, 13  ;;  %v1353_v0 = vshrl.u32 %v1321_v60, 13 }
  0x92   : > { %v1341_v1 = vmul.u32 2246822507, %v1309_v19  ;;  %v1345_v23 = vmul.u32 2246822507, %v1313_v46  ;;  %v1357_v24 = vshrl.u32 %v1325_v55, 13  ;;  %v1361_v51 = vshrl.u32 %v1329_v61, 13 }
  0x93   : > { %v1365_v58 = vshrl.u32 %v1333_v14, 13  ;;  %v1369_v34 = vshrl.u32 %v1337_v15, 13  ;;  %v1381_v35 = vxor.u32 %v1349_v50, %v1317_v32  ;;  %v1385_v56 = vxor.u32 %v1353_v0, %v1321_v60 }
  0x94   : > { %v1373_v36 = vshrl.u32 %v1341_v1, 13  ;;  %v1377_v26 = vshrl.u32 %v1345_v23, 13  ;;  %v1389_v37 = vxor.u32 %v1357_v24, %v1325_v55  ;;  %v1393_v11 = vxor.u32 %v1361_v51, %v1329_v61 }
  0x95   : > { %v1397_v63 = vxor.u32 %v1365_v58, %v1333_v14  ;;  %v2414_v22 = vxor.u32 %v1369_v34, %v1337_v15  ;;  %v1413_v40 = vmul.u32 3266489909, %v1381_v35  ;;  %v1417_v7 = vmul.u32 3266489909, %v1385_v56 }
  0x96   : > { %v2416_v43 = vxor.u32 %v1373_v36, %v1341_v1  ;;  %v2418_v44 = vxor.u32 %v1377_v26, %v1345_v23  ;;  %v1421_v19 = vmul.u32 3266489909, %v1389_v37  ;;  %v1425_v46 = vmul.u32 3266489909, %v1393_v11 }
  0x97   : > { %3330 = vst [vmem:[#allocation24_spill] sm:$0xff] %v2414_v22  ;;  %v1462_v60 = vshrl.u32 %v1430_v29, 16  ;;  %v3333_v32 = vmul.u32 3266489909, %v2358_v45  ;;  %v1429_v61 = vmul.u32 3266489909, %v1397_v63  ;;  %v1197_v35 = vadd.s32 %v2221_v59, %v1191_v33 }
  0x98   : > { %3331 = vst [vmem:[#allocation25_spill] sm:$0xff] %v2416_v43  ;;  %3332 = vst [vmem:[#allocation26_spill] sm:$0xff] %v2418_v44  ;;  %v3334_v14 = vmul.u32 3266489909, %v2365_v10  ;;  %v3335_v50 = vmul.u32 3266489909, %v2367_v48 }
  0x99   : > { %v1466_v55 = vshrl.u32 %v3333_v32, 16  ;;  %v3336_v1 = vmul.u32 3266489909, %v2344_v25  ;;  %v3249_v24 = vmul.u32 3266489909, %v2414_v22  ;;  %v1445_v58 = vshrl.u32 %v1413_v40, 16 }
  0x9a   : > { %v1470_v15 = vshrl.u32 %v3334_v14, 16  ;;  %v1474_v0 = vshrl.u32 %v3335_v50, 16  ;;  %v3248_v51 = vmul.u32 3266489909, %v2416_v43  ;;  %v1449_v34 = vshrl.u32 %v1417_v7, 16 }
  0x9b   : > { %v2432_v23 = vxor.u32 %v1446_v12, %v3336_v1  ;;  %v3247_v63 = vmul.u32 3266489909, %v2418_v44  ;;  %v1453_v56 = vshrl.u32 %v1421_v19, 16  ;;  %v1457_v36 = vshrl.u32 %v1425_v46, 16 }
  0x9c   : > { %v1461_v26 = vshrl.u32 %v1429_v61, 16  ;;  %v3338_v37 = vmul.u32 3266489909, %v2346_v38  ;;  %v3340_v25 = vmul.u32 3266489909, %v2348_v39  ;;  %v2448_v32 = vxor.u32 %v1458_v62, %v1426_v28 }
  0x9d   : > { %3337 = vst [vmem:[#allocation27_spill] sm:$0xff] %v2432_v23  ;;  %v2452_v59 = vxor.u32 %v1462_v60, %v1430_v29  ;;  %v3344_v33 = vmul.u32 3266489909, %v2358_v45  ;;  %v3346_v38 = vmul.u32 3266489909, %v2365_v10  ;;  %v3348_v39 = vmov %v3335_v50 }
  0x9e   : > { %v2440_v11 = vxor.u32 %v1450_v2, %v3338_v37  ;;  %v2444_v12 = vxor.u32 %v1454_v49, %v3340_v25  ;;  %3342 = vst [vmem:[#allocation30_spill] sm:$0xff] %v2448_v32  ;;  %v2464_v49 = vxor.u32 %v1474_v0, %v3348_v39  ;;  %v2468_v41 = vshrl.u32 %v3249_v24, 16 }
  0x9f   : > { %3343 = vst [vmem:[#allocation31_spill] sm:$0xff] %v2452_v59  ;;  %v2456_v14 = vxor.u32 %v1466_v55, %v3344_v33  ;;  %v2460_v2 = vxor.u32 %v1470_v15, %v3346_v38  ;;  %v2472_v42 = vshrl.u32 %v3248_v51, 16  ;;  %v2474_v62 = vxor.u32 %v1445_v58, %v1413_v40  ;;  %v3361_v58 = vld [vmem:[#allocation8_spill] sm:$0xff] }
  0xa0   : > { %3339 = vst [vmem:[#allocation28_spill] sm:$0xff] %v2440_v11  ;;  %3341 = vst [vmem:[#allocation29_spill] sm:$0xff] %v2444_v12  ;;  %v2476_v45 = vxor.u32 %v1449_v34, %v1417_v7  ;;  %v1219_v28 = vmul.u32 2246822519, %v1197_v35  ;;  %v2480_v10 = vshrl.u32 %v3247_v63, 16  ;;  %v2482_v48 = vxor.u32 %v1453_v56, %v1421_v19 }
  0xa1   : > { %3345 = vst [vmem:[#allocation32_spill] sm:$0xff] %v2456_v14  ;;  %3347 = vst [vmem:[#allocation33_spill] sm:$0xff] %v2460_v2  ;;  %v2484_v29 = vxor.u32 %v1457_v36, %v1425_v46  ;;  %v2486_v60 = vxor.u32 %v1461_v26, %v1429_v61 }
  0xa2   : > { %3349 = vst [vmem:[#allocation34_spill] sm:$0xff] %v2464_v49  ;;  %3350 = vst [vmem:[#allocation35_spill] sm:$0xff] %v2468_v41  ;;  %v1223_v15 = vadd.s32 %v1219_v28, %v2229_v4  ;;  %v2490_v50 = vadd.s32 %v1219_v28, %v2231_v5  ;;  %v2493_v40 = vadd.s32 %v1219_v28, %v2233_v8  ;;  %v3360_v5 = vld [vmem:[#allocation7_spill] sm:$0xff] }
  0xa3   : > { %3351 = vst [vmem:[#allocation36_spill] sm:$0xff] %v2472_v42  ;;  %3352 = vst [vmem:[#allocation37_spill] sm:$0xff] %v2474_v62  ;;  %v2496_v7 = vadd.s32 %v1219_v28, %v2238_v16  ;;  %v2502_v61 = vadd.s32 %v1219_v28, %v2240_v17  ;;  %v2505_v1 = vadd.s32 %v1219_v28, %v2242_v18  ;;  %v3363_v18 = vld [vmem:[#allocation9_spill] sm:$0xff] }
  0xa4   : > { %3353 = vst [vmem:[#allocation38_spill] sm:$0xff] %v2476_v45  ;;  %3354 = vst [vmem:[#allocation39_spill] sm:$0xff] %v2480_v10  ;;  %v2508_v4 = vadd.s32 %v1219_v28, %v2245_v20  ;;  %v2517_v56 = vadd.s32 %v1219_v28, %v2247_v21  ;;  %v1255_v36 = vshrl.u32 %v1223_v15, 16  ;;  %v1259_v33 = vshrl.u32 %v2490_v50, 16 }
  0xa5   : > { %3355 = vst [vmem:[#allocation40_spill] sm:$0xff] %v2482_v48  ;;  %3356 = vst [vmem:[#allocation41_spill] sm:$0xff] %v2484_v29 }
  0xa6   : > { %3357 = vst [vmem:[#allocation42_spill] sm:$0xff] %v2486_v60  ;;  %3358 = vst [vmem:[#allocation43_spill] sm:$0xff] %v2505_v1  ;;  %v1263_v60 = vshrl.u32 %v2493_v40, 16 }
  0xa7   : > { %3359 = vst [vmem:[#allocation44_spill] sm:$0xff] %v2508_v4  ;;  %3362 = vst [vmem:[#allocation7_spill] sm:$0xff] %v2517_v56 }
 0x133   : > { %v729_v55 = vpop.f32.mrb[0].mxu0 }
 0x134   : > { %v2499_v0 = vadd.f32 %v729_v55, %v2304_v3  ;;  %v802_v19 = vpop.f32.mrb[0].mxu1  ;;  %v731_v46 = vpop.f32.mrb[1].mxu0 }
 0x135   : > { %v2511_v8 = vadd.f32 %v802_v19, %v3360_v5  ;;  %v2514_v16 = vadd.f32 %v731_v46, %v3361_v58  ;;  %v804_v34 = vpop.f32.mrb[1].mxu1  ;;  %v733_v35 = vpop.f32.mrb[2].mxu0 }
 0x136   : > { %v893_v17 = vmul.f32 %v2499_v0, %v2499_v0  ;;  %v2522_v26 = vadd.f32 %v804_v34, %v3363_v18  ;;  %v2525_v20 = vadd.f32 %v733_v35, %v2304_v3  ;;  %v806_v37 = vpop.f32.mrb[2].mxu1  ;;  %v735_v25 = vpop.f32.mrb[3].mxu0 }
 0x137   : > { %v895_v38 = vmul.f32 %v2511_v8, %v2511_v8  ;;  %v894_v21 = vmul.f32 %v2514_v16, %v2514_v16  ;;  %v2533_v39 = vadd.f32 %v806_v37, %v3360_v5  ;;  %v2536_v28 = vadd.f32 %v735_v25, %v3361_v58  ;;  %v808_v55 = vpop.f32.mrb[3].mxu1 }
 0x138   : > { %3364 = vst [vmem:[#allocation8_spill] sm:$0xff] %v2522_v26  ;;  %v896_v19 = vmul.f32 %v2522_v26, %v2522_v26  ;;  %v841_v46 = vadd.f32 %v2525_v20, %v2499_v0  ;;  %v897_v34 = vmul.f32 %v2525_v20, %v2525_v20  ;;  %v2545_v35 = vadd.f32 %v808_v55, %v3363_v18 }
 0x139   : > { %v867_v37 = vadd.f32 %v2533_v39, %v2511_v8  ;;  %v899_v25 = vmul.f32 %v2533_v39, %v2533_v39  ;;  %v854_v63 = vadd.f32 %v2536_v28, %v2514_v16  ;;  %v898_v51 = vmul.f32 %v2536_v28, %v2536_v28 }
 0x13a   : > { %3365 = vst [vmem:[#allocation9_spill] sm:$0xff] %v2545_v35  ;;  %v925_v24 = vadd.f32 %v897_v34, %v893_v17  ;;  %v880_v13 = vadd.f32 %v2545_v35, %v2522_v26  ;;  %v900_v55 = vmul.f32 %v2545_v35, %v2545_v35 }
 0x13b   : > { %v951_v29 = vadd.f32 %v899_v25, %v895_v38  ;;  %v938_v48 = vadd.f32 %v898_v51, %v894_v21  ;;  %v739_v45 = vpop.f32.mrb[4].mxu0 }
 0x13c   : > { %v964_v49 = vadd.f32 %v900_v55, %v896_v19  ;;  %v2563_v2 = vadd.f32 %v739_v45, %v2304_v3  ;;  %v812_v17 = vpop.f32.mrb[4].mxu1  ;;  %v741_v34 = vpop.f32.mrb[5].mxu0  ;;  %v2574_v19 = vxor.u32 %v1255_v36, %v1223_v15 }
 0x13d   : > { %v2568_v32 = vadd.f32 %v812_v17, %v3360_v5  ;;  %v2571_v51 = vadd.f32 %v741_v34, %v3361_v58  ;;  %v814_v38 = vpop.f32.mrb[5].mxu1  ;;  %v743_v21 = vpop.f32.mrb[6].mxu0 }
 0x13e   : > { %3366 = vst [vmem:[#allocation45_spill] sm:$0xff] %v2574_v19  ;;  %v842_v45 = vadd.f32 %v841_v46, %v2563_v2  ;;  %v901_v55 = vmul.f32 %v2563_v2, %v2563_v2  ;;  %v2580_v14 = vadd.f32 %v814_v38, %v3363_v18  ;;  %v2583_v17 = vadd.f32 %v743_v21, %v2304_v3  ;;  %v816_v59 = vpop.f32.mrb[6].mxu1  ;;  %v745_v34 = vpop.f32.mrb[7].mxu0 }
 0x13f   : > { %v868_v57 = vadd.f32 %v867_v37, %v2568_v32  ;;  %v903_v25 = vmul.f32 %v2568_v32, %v2568_v32  ;;  %v855_v15 = vadd.f32 %v854_v63, %v2571_v51  ;;  %v902_v36 = vmul.f32 %v2571_v51, %v2571_v51  ;;  %v818_v46 = vpop.f32.mrb[7].mxu1 }
 0x140   : > { %3367 = vst [vmem:[#allocation46_spill] sm:$0xff] %v2580_v14  ;;  %v926_v62 = vadd.f32 %v925_v24, %v901_v55  ;;  %v881_v38 = vadd.f32 %v880_v13, %v2580_v14  ;;  %v904_v21 = vmul.f32 %v2580_v14, %v2580_v14  ;;  %v843_v12 = vadd.f32 %v842_v45, %v2583_v17 }
 0x141   : > { %v952_v11 = vadd.f32 %v951_v29, %v903_v25  ;;  %v939_v23 = vadd.f32 %v938_v48, %v902_v36  ;;  %v905_v37 = vmul.f32 %v2583_v17, %v2583_v17  ;;  %v2598_v52 = vadd.f32 %v816_v59, %v3360_v5 }
 0x142   : > { %v965_v63 = vadd.f32 %v964_v49, %v904_v21  ;;  %v2601_v31 = vadd.f32 %v745_v34, %v3361_v58  ;;  %v2604_v24 = vadd.f32 %v818_v46, %v3363_v18  ;;  %v2607_v13 = vxor.u32 %v1259_v33, %v2490_v50 }
 0x143   : > { %v927_v55 = vadd.f32 %v926_v62, %v905_v37  ;;  %v869_v29 = vadd.f32 %v868_v57, %v2598_v52  ;;  %v907_v48 = vmul.f32 %v2598_v52, %v2598_v52  ;;  %v749_v25 = vpop.f32.mrb[8].mxu0  ;;  %v2613_v59 = vxor.u32 %v1263_v60, %v2493_v40 }
 0x144   : > { %3368 = vst [vmem:[#allocation47_spill] sm:$0xff] %v2604_v24  ;;  %3369 = vst [vmem:[#allocation48_spill] sm:$0xff] %v2607_v13  ;;  %v856_v49 = vadd.f32 %v855_v15, %v2601_v31  ;;  %v906_v45 = vmul.f32 %v2601_v31, %v2601_v31  ;;  %v882_v34 = vadd.f32 %v881_v38, %v2604_v24  ;;  %v822_v62 = vpop.f32.mrb[8].mxu1  ;;  %v751_v33 = vpop.f32.mrb[9].mxu0 }
 0x145   : > { %3370 = vst [vmem:[#allocation49_spill] sm:$0xff] %v2613_v59  ;;  %v908_v50 = vmul.f32 %v2604_v24, %v2604_v24  ;;  %v953_v57 = vadd.f32 %v952_v11, %v907_v48  ;;  %v2622_v36 = vadd.f32 %v749_v25, %v2304_v3  ;;  %v2625_v46 = vadd.f32 %v822_v62, %v3360_v5  ;;  %v824_v40 = vpop.f32.mrb[9].mxu1  ;;  %v753_v15 = vpop.f32.mrb[10].mxu0 }
 0x146   : > { %v2628_v60 = vadd.f32 %v751_v33, %v3361_v58  ;;  %v940_v21 = vadd.f32 %v939_v23, %v906_v45  ;;  %v2631_v38 = vadd.f32 %v824_v40, %v3363_v18  ;;  %v2634_v30 = vadd.f32 %v753_v15, %v2304_v3  ;;  %v826_v11 = vpop.f32.mrb[10].mxu1  ;;  %v755_v48 = vpop.f32.mrb[11].mxu0 }
 0x147   : > { %v966_v37 = vadd.f32 %v965_v63, %v908_v50  ;;  %v844_v25 = vadd.f32 %v843_v12, %v2622_v36  ;;  %v909_v62 = vmul.f32 %v2622_v36, %v2622_v36  ;;  %v870_v33 = vadd.f32 %v869_v29, %v2625_v46  ;;  %v828_v23 = vpop.f32.mrb[11].mxu1 }
 0x148   : > { %3371 = vst [vmem:[#allocation50_spill] sm:$0xff] %v2631_v38  ;;  %v911_v53 = vmul.f32 %v2625_v46, %v2625_v46  ;;  %v857_v63 = vadd.f32 %v856_v49, %v2628_v60  ;;  %v910_v45 = vmul.f32 %v2628_v60, %v2628_v60  ;;  %v883_v50 = vadd.f32 %v882_v34, %v2631_v38 }
 0x149   : > { %v912_v40 = vmul.f32 %v2631_v38, %v2631_v38  ;;  %v928_v12 = vadd.f32 %v927_v55, %v909_v62  ;;  %v845_v27 = vadd.f32 %v844_v25, %v2634_v30  ;;  %v913_v29 = vmul.f32 %v2634_v30, %v2634_v30 }
 0x14a   : > { %v954_v15 = vadd.f32 %v953_v57, %v911_v53  ;;  %v941_v54 = vadd.f32 %v940_v21, %v910_v45  ;;  %v2652_v47 = vadd.f32 %v826_v11, %v3360_v5  ;;  %v2655_v49 = vadd.f32 %v755_v48, %v3361_v58 }
 0x14b   : > { %v967_v6 = vadd.f32 %v966_v37, %v912_v40  ;;  %v929_v9 = vadd.f32 %v928_v12, %v913_v29  ;;  %v2658_v34 = vadd.f32 %v828_v23, %v3363_v18  ;;  %v759_v59 = vpop.f32.mrb[12].mxu0  ;;  %v3373_v53 = vshrl.u32 %v2496_v7, 16 }
 0x14c   : > { %v3375_v57 = vshrl.u32 %v2502_v61, 16  ;;  %v871_v37 = vadd.f32 %v870_v33, %v2652_v47  ;;  %v915_v11 = vmul.f32 %v2652_v47, %v2652_v47  ;;  %v858_v48 = vadd.f32 %v857_v63, %v2655_v49  ;;  %v832_v62 = vpop.f32.mrb[12].mxu1  ;;  %v761_v23 = vpop.f32.mrb[13].mxu0 }
 0x14d   : > { %3372 = vst [vmem:[#allocation51_spill] sm:$0xff] %v2658_v34  ;;  %v2663_v55 = vxor.u32 %v3373_v53, %v2496_v7  ;;  %v914_v25 = vmul.f32 %v2655_v49, %v2655_v49  ;;  %v884_v7 = vadd.f32 %v883_v50, %v2658_v34  ;;  %v916_v45 = vmul.f32 %v2658_v34, %v2658_v34  ;;  %v834_v40 = vpop.f32.mrb[13].mxu1  ;;  %v763_v12 = vpop.f32.mrb[14].mxu0 }
 0x14e   : > { %v2668_v21 = vxor.u32 %v3375_v57, %v2502_v61  ;;  %v2680_v61 = vadd.f32 %v759_v59, %v2304_v3  ;;  %v2683_v33 = vadd.f32 %v832_v62, %v3360_v5  ;;  %v955_v29 = vadd.f32 %v954_v15, %v915_v11  ;;  %v836_v50 = vpop.f32.mrb[14].mxu1 }
 0x14f   : > { %3374 = vst [vmem:[#allocation52_spill] sm:$0xff] %v2663_v55  ;;  %v942_v63 = vadd.f32 %v941_v54, %v914_v25  ;;  %v2686_v53 = vadd.f32 %v761_v23, %v3361_v58  ;;  %v2689_v57 = vadd.f32 %v834_v40, %v3363_v18  ;;  %v968_v55 = vadd.f32 %v967_v6, %v916_v45  ;;  %v838_v44 = vpop.f32.mrb[15].mxu1 }
 0x150   : > { %3376 = vst [vmem:[#allocation53_spill] sm:$0xff] %v2668_v21  ;;  %v765_v21 = vpop.f32.mrb[15].mxu0  ;;  %v846_v10 = vadd.f32 %v845_v27, %v2680_v61  ;;  %v917_v59 = vmul.f32 %v2680_v61, %v2680_v61  ;;  %v872_v62 = vadd.f32 %v871_v37, %v2683_v33  ;;  %v919_v54 = vmul.f32 %v2683_v33, %v2683_v33 }
 0x151   : > { %3377 = vst [vmem:[#allocation54_spill] sm:$0xff] %v2689_v57  ;;  %v859_v15 = vadd.f32 %v858_v48, %v2686_v53  ;;  %v918_v11 = vmul.f32 %v2686_v53, %v2686_v53  ;;  %v885_v25 = vadd.f32 %v884_v7, %v2689_v57  ;;  %v920_v6 = vmul.f32 %v2689_v57, %v2689_v57 }
 0x152   : > { %v930_v23 = vadd.f32 %v929_v9, %v917_v59  ;;  %v2704_v27 = vadd.f32 %v763_v12, %v2304_v3  ;;  %v2707_v37 = vadd.f32 %v836_v50, %v3360_v5  ;;  %v956_v45 = vadd.f32 %v955_v29, %v919_v54 }
 0x153   : > { %v943_v40 = vadd.f32 %v942_v63, %v918_v11  ;;  %v2710_v13 = vadd.f32 %v765_v21, %v3361_v58  ;;  %v2713_v48 = vadd.f32 %v838_v44, %v3363_v18  ;;  %v969_v19 = vadd.f32 %v968_v55, %v920_v6 }
 0x154   : > { %v847_v9 = vadd.f32 %v846_v10, %v2704_v27  ;;  %v921_v7 = vmul.f32 %v2704_v27, %v2704_v27  ;;  %v873_v3 = vadd.f32 %v872_v62, %v2707_v37  ;;  %v923_v5 = vmul.f32 %v2707_v37, %v2707_v37 }
 0x155   : > { %3378 = vst [vmem:[#allocation55_spill] sm:$0xff] %v2713_v48  ;;  %v860_v12 = vadd.f32 %v859_v15, %v2710_v13  ;;  %v922_v58 = vmul.f32 %v2710_v13, %v2710_v13  ;;  %v886_v21 = vadd.f32 %v885_v25, %v2713_v48  ;;  %v924_v10 = vmul.f32 %v2713_v48, %v2713_v48 }
 0x156   : > { %v848_v44 = vrot.slane %v847_v9, 4  ;;  %v931_v18 = vadd.f32 %v930_v23, %v921_v7  ;;  %v874_v55 = vrot.slane %v873_v3, 4  ;;  %v957_v29 = vadd.f32 %v956_v45, %v923_v5 }
 0x157   : > { %v861_v63 = vrot.slane %v860_v12, 4  ;;  %v944_v50 = vadd.f32 %v943_v40, %v922_v58  ;;  %v887_v59 = vrot.slane %v886_v21, 4  ;;  %v970_v6 = vadd.f32 %v969_v19, %v924_v10 }
 0x158   : > { %v849_v62 = vadd.f32 %v848_v44, %v847_v9  ;;  %v932_v54 = vrot.slane %v931_v18, 4  ;;  %v875_v11 = vadd.f32 %v874_v55, %v873_v3  ;;  %v958_v15 = vrot.slane %v957_v29, 4 }
 0x159   : > { %v862_v42 = vadd.f32 %v861_v63, %v860_v12  ;;  %v945_v43 = vrot.slane %v944_v50, 4  ;;  %v888_v41 = vadd.f32 %v887_v59, %v886_v21  ;;  %v971_v23 = vrot.slane %v970_v6, 4 }
 0x15a   : > { %v850_v22 = vrot.slane %v849_v62, 2  ;;  %v933_v25 = vadd.f32 %v932_v54, %v931_v18  ;;  %v876_v56 = vrot.slane %v875_v11, 2  ;;  %v959_v7 = vadd.f32 %v958_v15, %v957_v29 }
 0x15b   : > { %v863_v4 = vrot.slane %v862_v42, 2  ;;  %v946_v1 = vadd.f32 %v945_v43, %v944_v50  ;;  %v889_v48 = vrot.slane %v888_v41, 2  ;;  %v972_v58 = vadd.f32 %v971_v23, %v970_v6 }
 0x15c   : > { %v851_v45 = vadd.f32 %v850_v22, %v849_v62  ;;  %v934_v5 = vrot.slane %v933_v25, 2  ;;  %v877_v40 = vadd.f32 %v876_v56, %v875_v11  ;;  %v960_v9 = vrot.slane %v959_v7, 2 }
 0x15d   : > { %v864_v44 = vadd.f32 %v863_v4, %v862_v42  ;;  %v947_v3 = vrot.slane %v946_v1, 2  ;;  %v890_v19 = vadd.f32 %v889_v48, %v888_v41  ;;  %v973_v21 = vrot.slane %v972_v58, 2 }
 0x15e   : > { %v852_v55 = vrot.slane %v851_v45, 1  ;;  %v935_v12 = vadd.f32 %v934_v5, %v933_v25  ;;  %v878_v10 = vrot.slane %v877_v40, 1  ;;  %v961_v63 = vadd.f32 %v960_v9, %v959_v7 }
 0x15f   : > { %v865_v18 = vrot.slane %v864_v44, 1  ;;  %v948_v59 = vadd.f32 %v947_v3, %v946_v1  ;;  %v891_v54 = vrot.slane %v890_v19, 1  ;;  %v974_v50 = vadd.f32 %v973_v21, %v972_v58  ;;  %v3406_v58 = vld [vmem:[#allocation18_spill] sm:$0xff] }
 0x160   : > { %v853_v29 = vadd.f32 %v852_v55, %v851_v45  ;;  %v936_v15 = vrot.slane %v935_v12, 1  ;;  %v879_v43 = vadd.f32 %v878_v10, %v877_v40  ;;  %v962_v22 = vrot.slane %v961_v63, 1  ;;  %v3398_v55 = vld [vmem:[#allocation39_spill] sm:$0xff] }
 0x161   : > { %v866_v62 = vadd.f32 %v865_v18, %v864_v44  ;;  %v949_v56 = vrot.slane %v948_v59, 1  ;;  %v892_v11 = vadd.f32 %v891_v54, %v890_v19  ;;  %v975_v4 = vrot.slane %v974_v50, 1  ;;  %v3400_v44 = vld [vmem:[#allocation52_spill] sm:$0xff]  ;;  %v3407_v40 = vld [vmem:[#allocation19_spill] sm:$0xff] }
 0x162   : > { %v937_v6 = vadd.f32 %v936_v15, %v935_v12  ;;  %v2727_v42 = vmul.f32 0.015625, %v853_v29  ;;  %v2729_v41 = vmul.f32 0.015625, %v879_v43  ;;  %v963_v48 = vadd.f32 %v962_v22, %v961_v63  ;;  %v3390_v29 = vld [vmem:[#allocation35_spill] sm:$0xff]  ;;  %v3395_v63 = vld [vmem:[#allocation48_spill] sm:$0xff] }
 0x163   : > { %v950_v25 = vadd.f32 %v949_v56, %v948_v59  ;;  %v2731_v23 = vmul.f32 0.015625, %v866_v62  ;;  %v2733_v1 = vmul.f32 0.015625, %v892_v11  ;;  %v3393_v59 = vld [vmem:[#allocation36_spill] sm:$0xff]  ;;  %vm1524_vm5 = vcmp.ge.u32.totalorder %v3406_v58, 429496729 }
 0x164   : > { %v982_v7 = vmul.f32 0.015625, %v937_v6  ;;  %v986_v45 = vmul.f32 %v2727_v42, %v2727_v42  ;;  %v984_v10 = vmul.f32 0.015625, %v963_v48  ;;  %v988_v21 = vmul.f32 %v2729_v41, %v2729_v41 }
 0x165   : > { %3379 = vst [vmem:[#allocation56_spill] sm:$0xff] %v2733_v1  ;;  %v983_v11 = vmul.f32 0.015625, %v950_v25  ;;  %v987_v48 = vmul.f32 %v2731_v23, %v2731_v23  ;;  %v3388_v25 = vld [vmem:[#allocation24_spill] sm:$0xff]  ;;  %vm1528_vm6 = vcmp.ge.u32.totalorder %v3407_v40, 429496729  ;;  %v3415_v38 = vsub.f32 %v2499_v0, %v2727_v42 }
 0x166   : > { %v990_v19 = vsub.f32 %v982_v7, %v986_v45  ;;  %v992_v22 = vsub.f32 %v984_v10, %v988_v21  ;;  %v976_v45 = vadd.f32 %v975_v4, %v974_v50  ;;  %v989_v10 = vmul.f32 %v2733_v1, %v2733_v1 }
 0x167   : > { %v3389_v15 = vmul.u32 3266489909, %v3388_v25  ;;  %v3410_v57 = vmul.u32 2246822507, %v3400_v44  ;;  %v3420_v0 = vsub.f32 %v2634_v30, %v2727_v42 }
 0x168   : > { %v994_v54 = vmax.f32 %v990_v19, 0.0  ;;  %v996_v19 = vmax.f32 %v992_v22, 0.0 }
 0x169   : > { %v2825_v22 = vxor.u32 %v3390_v29, %v3389_v15  ;;  %v3401_v15 = vld [vmem:[#allocation14_spill] sm:$0xff]  ;;  %v3408_v29 = vld [vmem:[#allocation20_spill] sm:$0xff] }
 0x16a   : > { %v1030_v6 = vadd.f32 1e-05, %v994_v54  ;;  %v991_v54 = vsub.f32 %v983_v11, %v987_v48  ;;  %v1032_v62 = vadd.f32 1e-05, %v996_v19  ;;  %v985_v48 = vmul.f32 0.015625, %v976_v45  ;;  %v3384_v19 = vld [vmem:[#allocation44_spill] sm:$0xff] }
 0x16b   : > { %v3385_v56 = vshrl.u32 %v3384_v19, 16  ;;  %vm1508_vm1 = vcmp.ge.u32.totalorder %v3401_v15, 429496729  ;;  %vm1532_vm7 = vcmp.ge.u32.totalorder %v3408_v29, 429496729  ;;  %v3437_v29 = vsub.f32 %v2625_v46, %v2729_v41 }
 0x16c   : > { %1942 = vrsqrt.f32 %v1030_v6  ;;  %v995_v21 = vmax.f32 %v991_v54, 0.0  ;;  %v993_v7 = vsub.f32 %v985_v48, %v989_v10  ;;  %v3381_v6 = vld [vmem:[#allocation43_spill] sm:$0xff]  ;;  %v3391_v10 = vld [vmem:[#allocation25_spill] sm:$0xff] }
 0x16d   : > { %1944 = vrsqrt.f32 %v1032_v62  ;;  %v3382_v62 = vshrl.u32 %v3381_v6, 16  ;;  %v2815_v50 = vxor.u32 %v3385_v56, %v3384_v19  ;;  %v3392_v48 = vmul.u32 3266489909, %v3391_v10  ;;  %v3396_v19 = vld [vmem:[#allocation26_spill] sm:$0xff]  ;;  %v3402_v10 = vld [vmem:[#allocation15_spill] sm:$0xff] }
 0x16e   : > { %v1031_v4 = vadd.f32 1e-05, %v995_v21  ;;  %v3386_v21 = vld [vmem:[#allocation7_spill] sm:$0xff]  ;;  %v3291_v56 = vmul.u32 2246822507, %v3395_v63 }
 0x16f   : > { %v2810_v45 = vxor.u32 %v3382_v62, %v3381_v6  ;;  %v3387_v54 = vshrl.u32 %v3386_v21, 16  ;;  %v2830_v6 = vxor.u32 %v3393_v59, %v3392_v48  ;;  %v3394_v62 = vld [vmem:[#allocation45_spill] sm:$0xff]  ;;  %v3397_v12 = vmul.u32 3266489909, %v3396_v19 }
 0x170   : > { %v3290_v18 = vmul.u32 2246822507, %v3394_v62  ;;  %vm1512_vm2 = vcmp.ge.u32.totalorder %v3402_v10, 429496729  ;;  %v3403_v59 = vld [vmem:[#allocation53_spill] sm:$0xff]  ;;  %1946 = vrsqrt.f32 %v1031_v4  ;;  %v2870_v4 = vshrl.u32 %v3410_v57, 13 }
 0x171   : > { %3383 = vst [vmem:[#allocation43_spill] sm:$0xff] %v2810_v45  ;;  %v2820_v43 = vxor.u32 %v3387_v54, %v3386_v21  ;;  %v2837_v3 = vxor.u32 %v3398_v55, %v3397_v12  ;;  %v997_v54 = vmax.f32 %v993_v7, 0.0  ;;  %v3399_v21 = vld [vmem:[#allocation49_spill] sm:$0xff]  ;;  %v2851_v55 = vshrl.u32 %v3291_v56, 13  ;;  %v3404_v12 = vld [vmem:[#allocation16_spill] sm:$0xff]  ;;  %v3434_v10 = vld [vmem:[#allocation34_spill] sm:$0xff] }
 0x172   : > { %v3296_v25 = vmul.u32 2246822507, %v3399_v21  ;;  %v2847_v19 = vshrl.u32 %v3290_v18, 13  ;;  %vm1516_vm3 = vcmp.ge.u32.totalorder %v3404_v12, 429496729  ;;  %v3405_v7 = vld [vmem:[#allocation17_spill] sm:$0xff]  ;;  %v3417_v57 = vsub.f32 %v2563_v2, %v2727_v42 }
 0x173   : > { %vm1520_vm4 = vcmp.ge.u32.totalorder %v3405_v7, 429496729  ;;  %v2857_v5 = vadd.f32 1e-05, %v997_v54  ;;  %v3409_v56 = vld [vmem:[#allocation21_spill] sm:$0xff]  ;;  %v3422_v2 = vsub.f32 %v2704_v27, %v2727_v42  ;;  %v3435_v12 = vsub.f32 %v2568_v32, %v2729_v41 }
 0x174   : > { %vm1536_vm8 = vcmp.ge.u32.totalorder %v3409_v56, 429496729  ;;  %v2866_v11 = vshrl.u32 %v3296_v25, 13  ;;  %v3411_v54 = vmul.u32 2246822507, %v3403_v59  ;;  %v3416_v25 = vsub.f32 %v2525_v20, %v2727_v42  ;;  %v3427_v59 = vld [vmem:[#allocation27_spill] sm:$0xff] }
 0x175   : > { %v3413_v18 = vmul.u32 2246822507, %v2810_v45  ;;  %v3421_v20 = vsub.f32 %v2680_v61, %v2727_v42  ;;  %vm1510_vm9 = vcmp.ge.u32.totalorder %v3427_v59, 429496729  ;;  %vm1538_vm0 = vcmp.ge.u32.totalorder %v3434_v10, 429496729 }
 0x176   : > { %v1943_v48 = vpop.eup %1942  ;;  %v2874_v9 = vshrl.u32 %v3411_v54, 13  ;;  %v3418_v54 = vsub.f32 %v2583_v17, %v2727_v42  ;;  %v3423_v17 = vld [vmem:[#allocation12_spill] sm:$0xff]  ;;  %v3438_v56 = vsub.f32 %v2652_v47, %v2729_v41  ;;  %v3440_v32 = vsub.f32 %v2707_v37, %v2729_v41 }
 0x177   : > { %v2878_v34 = vshrl.u32 %v3413_v18, 13  ;;  %v1038_v24 = vmul.f32 %v1943_v48, %v3415_v38  ;;  %v1042_v14 = vmul.f32 %v1943_v48, %v3416_v25  ;;  %v1046_v35 = vmul.f32 %v1943_v48, %v3417_v57 }
 0x178   : > { %3412 = vst [vmem:[#allocation44_spill] sm:$0xff] %v2874_v9  ;;  %v1050_v1 = vmul.f32 %v1943_v48, %v3418_v54  ;;  %v3419_v18 = vsub.f32 %v2622_v36, %v2727_v42  ;;  %v1058_v38 = vmul.f32 %v1943_v48, %v3420_v0  ;;  %v1062_v25 = vmul.f32 %v1943_v48, %v3421_v20  ;;  %v3424_v42 = vld [vmem:[#allocation13_spill] sm:$0xff] }
 0x179   : > { %3414 = vst [vmem:[#allocation7_spill] sm:$0xff] %v2878_v34  ;;  %v1066_v57 = vmul.f32 %v1943_v48, %v3422_v2  ;;  %v1945_v34 = vpop.eup %1944  ;;  %v1092_v54 = vmul.f32 %v3423_v17, %v1038_v24  ;;  %v1096_v36 = vmul.f32 %v3423_v17, %v1042_v14  ;;  %1948 = vrsqrt.f32 %v2857_v5 }
 0x17a   : > { %v1054_v26 = vmul.f32 %v1943_v48, %v3419_v18  ;;  %v1100_v18 = vmul.f32 %v3423_v17, %v1046_v35  ;;  %v1104_v30 = vmul.f32 %v3423_v17, %v1050_v1  ;;  %v1112_v61 = vmul.f32 %v3423_v17, %v1058_v38 }
 0x17b   : > { %v1116_v20 = vmul.f32 %v3423_v17, %v1062_v25  ;;  %v1120_v27 = vmul.f32 %v3423_v17, %v1066_v57  ;;  %v1146_v48 = vadd.f32 %v3424_v42, %v1092_v54  ;;  %v1150_v2 = vadd.f32 %v3424_v42, %v1096_v36 }
 0x17c   : > { %v1108_v0 = vmul.f32 %v3423_v17, %v1054_v26  ;;  %v1154_v24 = vadd.f32 %v3424_v42, %v1100_v18  ;;  %v1158_v14 = vadd.f32 %v3424_v42, %v1104_v30  ;;  %v1166_v1 = vadd.f32 %v3424_v42, %v1112_v61  ;;  %v3428_v61 = vld [vmem:[#allocation28_spill] sm:$0xff] }
 0x17d   : > { %v1170_v26 = vadd.f32 %v3424_v42, %v1116_v20  ;;  %v1174_v38 = vadd.f32 %v3424_v42, %v1120_v27  ;;  %v1540_v45 = vmul.f32 1.1111112, %v1146_v48  ;;  %v1544_v25 = vmul.f32 1.1111112, %v1150_v2  ;;  %v2932_v20 = vpop.eup %1946  ;;  %v3429_v2 = vld [vmem:[#allocation29_spill] sm:$0xff] }
 0x17e   : > { %v1162_v35 = vadd.f32 %v3424_v42, %v1108_v0  ;;  %v1548_v9 = vmul.f32 1.1111112, %v1154_v24  ;;  %v3425_v57 = vsub.f32 %v2511_v8, %v2729_v41  ;;  %v1552_v54 = vmul.f32 1.1111112, %v1158_v14  ;;  %v3430_v24 = vld [vmem:[#allocation30_spill] sm:$0xff]  ;;  %v3432_v14 = vld [vmem:[#allocation32_spill] sm:$0xff] }
 0x17f   : > { %v1560_v18 = vmul.f32 1.1111112, %v1166_v1  ;;  %v3426_v30 = vsub.f32 %v2533_v39, %v2729_v41  ;;  %vm1514_vm10 = vcmp.ge.u32.totalorder %v3428_v61, 429496729  ;;  %v1564_v27 = vmul.f32 1.1111112, %v1170_v26 }
 0x180   : > { %v1040_v17 = vmul.f32 %v1945_v34, %v3425_v57  ;;  %v1556_v36 = vmul.f32 1.1111112, %v1162_v35  ;;  %v1568_v42 = vmul.f32 1.1111112, %v1174_v38  ;;  %v1572_v8 = vsel %vm1508_vm1, %v1540_v45, 0.0  ;;  %v3431_v39 = vld [vmem:[#allocation31_spill] sm:$0xff] }
 0x181   : > { %v1044_v0 = vmul.f32 %v1945_v34, %v3426_v30  ;;  %v1576_v48 = vsel %vm1512_vm2, %v1544_v25, 0.0  ;;  %vm1518_vm11 = vcmp.ge.u32.totalorder %v3429_v2, 429496729  ;;  %vm1522_vm12 = vcmp.ge.u32.totalorder %v3430_v24, 429496729  ;;  %1604 = vst [vmem:[%s2951_s21] sm:$0xff] %v1572_v8 }
 0x182   : > { %vm1526_vm13 = vcmp.ge.u32.totalorder %v3431_v39, 429496729  ;;  %vm1530_vm14 = vcmp.ge.u32.totalorder %v3432_v14, 429496729  ;;  %v1580_v35 = vsel %vm1516_vm3, %v1548_v9, 0.0  ;;  %v1584_v1 = vsel %vm1520_vm4, %v1552_v54, 0.0 }
 0x183   : > { %v1588_v45 = vsel %vm1524_vm5, %v1556_v36, 0.0  ;;  %v1592_v15 = vsel %vm1528_vm6, %v1560_v18, 0.0  ;;  %1608 = vst [vmem:[%s2951_s21 + $0x20] sm:$0xff] %v1576_v48  ;;  %v3433_v9 = vld [vmem:[#allocation33_spill] sm:$0xff]  ;;  %v1596_v40 = vsel %vm1532_vm7, %v1564_v27, 0.0  ;;  %v1600_v58 = vsel %vm1536_vm8, %v1568_v42, 0.0 }
 0x184   : > { %vm1534_vm15 = vcmp.ge.u32.totalorder %v3433_v9, 429496729  ;;  %1612 = vst [vmem:[%s2951_s21 + $0x40] sm:$0xff] %v1580_v35  ;;  %1616 = vst [vmem:[%s2951_s21 + $0x60] sm:$0xff] %v1584_v1  ;;  %v1048_v7 = vmul.f32 %v1945_v34, %v3435_v12  ;;  %v3436_v26 = vsub.f32 %v2598_v52, %v2729_v41  ;;  %v1056_v25 = vmul.f32 %v1945_v34, %v3437_v29  ;;  %v3441_v52 = vld [vmem:[#allocation22_spill] sm:$0xff] }
 0x185   : > { %1620 = vst [vmem:[%s2951_s21 + $0x80] sm:$0xff] %v1588_v45  ;;  %1624 = vst [vmem:[%s2951_s21 + $0xa0] sm:$0xff] %v1592_v15  ;;  %v1060_v57 = vmul.f32 %v1945_v34, %v3438_v56  ;;  %v3439_v54 = vsub.f32 %v2683_v33, %v2729_v41  ;;  %v1068_v18 = vmul.f32 %v1945_v34, %v3440_v32  ;;  %v3442_v35 = vld [vmem:[#allocation10_spill] sm:$0xff]  ;;  %vm1529_vm6 = vcmp.ge.u32.totalorder %v2825_v22, 429496729 }
 0x186   : > { %v1052_v38 = vmul.f32 %v1945_v34, %v3436_v26  ;;  %1628 = vst [vmem:[%s2951_s21 + $0xc0] sm:$0xff] %v1596_v40  ;;  %1632 = vst [vmem:[%s2951_s21 + $0xe0] sm:$0xff] %v1600_v58  ;;  %v1094_v30 = vmul.f32 %v3441_v52, %v1040_v17  ;;  %v1098_v27 = vmul.f32 %v3441_v52, %v1044_v0  ;;  %vm1533_vm7 = vcmp.ge.u32.totalorder %v2830_v6, 429496729 }
 0x187   : > { %v1064_v36 = vmul.f32 %v1945_v34, %v3439_v54  ;;  %v1102_v42 = vmul.f32 %v3441_v52, %v1048_v7  ;;  %v1110_v8 = vmul.f32 %v3441_v52, %v1056_v25  ;;  %v1114_v47 = vmul.f32 %v3441_v52, %v1060_v57  ;;  %v3445_v54 = vld [vmem:[#allocation37_spill] sm:$0xff] }
 0x188   : > { %v1106_v46 = vmul.f32 %v3441_v52, %v1052_v38  ;;  %v1122_v33 = vmul.f32 %v3441_v52, %v1068_v18  ;;  %v1148_v1 = vadd.f32 %v3442_v35, %v1094_v30  ;;  %v1152_v34 = vadd.f32 %v3442_v35, %v1098_v27  ;;  %v3447_v30 = vld [vmem:[#allocation40_spill] sm:$0xff]  ;;  %v3449_v27 = vld [vmem:[#allocation42_spill] sm:$0xff] }
 0x189   : > { %v1118_v48 = vmul.f32 %v3441_v52, %v1064_v36  ;;  %v1156_v37 = vadd.f32 %v3442_v35, %v1102_v42  ;;  %v1164_v17 = vadd.f32 %v3442_v35, %v1110_v8  ;;  %v1168_v0 = vadd.f32 %v3442_v35, %v1114_v47  ;;  %v3446_v36 = vld [vmem:[#allocation38_spill] sm:$0xff] }
 0x18a   : > { %v1160_v41 = vadd.f32 %v3442_v35, %v1106_v46  ;;  %v1176_v15 = vadd.f32 %v3442_v35, %v1122_v33  ;;  %v1542_v40 = vmul.f32 1.1111112, %v1148_v1  ;;  %v1546_v58 = vmul.f32 1.1111112, %v1152_v34  ;;  %v3456_v34 = vld [vmem:[#allocation23_spill] sm:$0xff] }
 0x18b   : > { %v1172_v45 = vadd.f32 %v3442_v35, %v1118_v48  ;;  %v1550_v12 = vmul.f32 1.1111112, %v1156_v37  ;;  %v3443_v7 = vsub.f32 %v2514_v16, %v2731_v23  ;;  %v1558_v29 = vmul.f32 1.1111112, %v1164_v17 }
 0x18c   : > { %v1554_v38 = vmul.f32 1.1111112, %v1160_v41  ;;  %v1562_v25 = vmul.f32 1.1111112, %v1168_v0  ;;  %v3444_v56 = vsub.f32 %v2536_v28, %v2731_v23  ;;  %vm1509_vm1 = vcmp.ge.u32.totalorder %v3445_v54, 429496729 }
 0x18d   : > { %v1039_v26 = vmul.f32 %v2932_v20, %v3443_v7  ;;  %vm1513_vm2 = vcmp.ge.u32.totalorder %v3446_v36, 429496729  ;;  %v1566_v32 = vmul.f32 1.1111112, %v1172_v45  ;;  %v1570_v18 = vmul.f32 1.1111112, %v1176_v15 }
 0x18e   : > { %v1043_v57 = vmul.f32 %v2932_v20, %v3444_v56  ;;  %v1574_v16 = vsel %vm1510_vm9, %v1542_v40, 0.0  ;;  %v1578_v52 = vsel %vm1514_vm10, %v1546_v58, 0.0  ;;  %vm1517_vm3 = vcmp.ge.u32.totalorder %v3447_v30, 429496729  ;;  %v3448_v28 = vld [vmem:[#allocation41_spill] sm:$0xff]  ;;  %v3457_v15 = vld [vmem:[#allocation11_spill] sm:$0xff] }
 0x18f   : > { %vm1521_vm4 = vcmp.ge.u32.totalorder %v3448_v28, 429496729  ;;  %vm1525_vm5 = vcmp.ge.u32.totalorder %v3449_v27, 429496729  ;;  %v1582_v42 = vsel %vm1518_vm11, %v1550_v12, 0.0  ;;  %v1586_v59 = vsel %vm1522_vm12, %v1554_v38, 0.0 }
 0x190   : > { %v1590_v61 = vsel %vm1526_vm13, %v1558_v29, 0.0  ;;  %v1594_v46 = vsel %vm1530_vm14, %v1562_v25, 0.0  ;;  %1606 = vst [vmem:[%s2951_s21 + $0x10] sm:$0xff] %v1574_v16  ;;  %1610 = vst [vmem:[%s2951_s21 + $0x30] sm:$0xff] %v1578_v52  ;;  %vm1537_vm8 = vcmp.ge.u32.totalorder %v2837_v3, 429496729  ;;  %v3450_v39 = vsub.f32 %v2571_v51, %v2731_v23 }
 0x191   : > { %v1598_v2 = vsel %vm1534_vm15, %v1566_v32, 0.0  ;;  %v1602_v24 = vsel %vm1538_vm0, %v1570_v18, 0.0  ;;  %1614 = vst [vmem:[%s2951_s21 + $0x50] sm:$0xff] %v1582_v42  ;;  %1618 = vst [vmem:[%s2951_s21 + $0x70] sm:$0xff] %v1586_v59  ;;  %v3451_v8 = vsub.f32 %v2601_v31, %v2731_v23  ;;  %v3452_v9 = vsub.f32 %v2628_v60, %v2731_v23 }
 0x192   : > { %1622 = vst [vmem:[%s2951_s21 + $0x90] sm:$0xff] %v1590_v61  ;;  %1626 = vst [vmem:[%s2951_s21 + $0xb0] sm:$0xff] %v1594_v46  ;;  %v1047_v14 = vmul.f32 %v2932_v20, %v3450_v39  ;;  %v3453_v48 = vsub.f32 %v2655_v49, %v2731_v23  ;;  %v3454_v51 = vsub.f32 %v2686_v53, %v2731_v23  ;;  %v3458_v18 = vmul.u32 2246822507, %v3394_v62 }
 0x193   : > { %v1051_v47 = vmul.f32 %v2932_v20, %v3451_v8  ;;  %1630 = vst [vmem:[%s2951_s21 + $0xd0] sm:$0xff] %v1598_v2  ;;  %1634 = vst [vmem:[%s2951_s21 + $0xf0] sm:$0xff] %v1602_v24  ;;  %v1055_v10 = vmul.f32 %v2932_v20, %v3452_v9  ;;  %v3455_v31 = vsub.f32 %v2710_v13, %v2731_v23  ;;  %v3459_v30 = vmul.u32 2246822507, %v2815_v50  ;;  %v3464_v8 = vld [vmem:[#allocation53_spill] sm:$0xff]  ;;  %v3466_v9 = vld [vmem:[#allocation44_spill] sm:$0xff]  ;;  %v1949_v50 = vpop.eup %1948 }
 0x194   : > { %v1059_v33 = vmul.f32 %v2932_v20, %v3453_v48  ;;  %v1063_v35 = vmul.f32 %v2932_v20, %v3454_v51  ;;  %v1093_v37 = vmul.f32 %v3456_v34, %v1039_v26  ;;  %v1097_v60 = vmul.f32 %v3456_v34, %v1043_v57  ;;  %v3467_v48 = vld [vmem:[#allocation43_spill] sm:$0xff] }
 0x195   : > { %v1067_v1 = vmul.f32 %v2932_v20, %v3455_v31  ;;  %v1101_v41 = vmul.f32 %v3456_v34, %v1047_v14  ;;  %v1105_v49 = vmul.f32 %v3456_v34, %v1051_v47  ;;  %v1109_v17 = vmul.f32 %v3456_v34, %v1055_v10  ;;  %v3469_v51 = vld [vmem:[#allocation7_spill] sm:$0xff] }
 0x196   : > { %v1113_v0 = vmul.f32 %v3456_v34, %v1059_v33  ;;  %v1117_v53 = vmul.f32 %v3456_v34, %v1063_v35  ;;  %v1147_v13 = vadd.f32 %v3457_v15, %v1093_v37  ;;  %v1151_v23 = vadd.f32 %v3457_v15, %v1097_v60  ;;  %v3472_v37 = vld [vmem:[#allocation6_spill] sm:$0xff] }
 0x197   : > { %v1121_v45 = vmul.f32 %v3456_v34, %v1067_v1  ;;  %v1155_v20 = vadd.f32 %v3457_v15, %v1101_v41  ;;  %v1159_v40 = vadd.f32 %v3457_v15, %v1105_v49  ;;  %v1163_v58 = vadd.f32 %v3457_v15, %v1109_v17  ;;  %v1951_v60 = vld [vmem:[%s2272_s18] sm:$0xf] }
 0x198   : > { %v1167_v12 = vadd.f32 %v3457_v15, %v1113_v0  ;;  %v1171_v7 = vadd.f32 %v3457_v15, %v1117_v53  ;;  %v1541_v38 = vmul.f32 1.1111112, %v1147_v13  ;;  %v1545_v29 = vmul.f32 1.1111112, %v1151_v23 }
 0x199   : > { %v1175_v26 = vadd.f32 %v3457_v15, %v1121_v45  ;;  %v1549_v25 = vmul.f32 1.1111112, %v1155_v20  ;;  %v1553_v56 = vmul.f32 1.1111112, %v1159_v40  ;;  %v1557_v57 = vmul.f32 1.1111112, %v1163_v58 }
 0x19a   : > { %v1561_v32 = vmul.f32 1.1111112, %v1167_v12  ;;  %v1383_v16 = vxor.u32 %v2847_v19, %v3458_v18  ;;  %v1565_v52 = vmul.f32 1.1111112, %v1171_v7  ;;  %v1573_v59 = vsel %vm1509_vm1, %v1541_v38, 0.0  ;;  %v3473_v40 = vld [vmem:[#allocation8_spill] sm:$0xff] }
 0x19b   : > { %v1569_v42 = vmul.f32 1.1111112, %v1175_v26  ;;  %v1577_v5 = vsel %vm1513_vm2, %v1545_v29, 0.0  ;;  %v1581_v61 = vsel %vm1517_vm3, %v1549_v25, 0.0  ;;  %v1585_v62 = vsel %vm1521_vm4, %v1553_v56, 0.0  ;;  %1605 = vst [vmem:[%s2951_s21 + $0x8] sm:$0xff] %v1573_v59 }
 0x19c   : > { %v1589_v19 = vsel %vm1525_vm5, %v1557_v57, 0.0  ;;  %v1593_v46 = vsel %vm1529_vm6, %v1561_v32, 0.0  ;;  %1609 = vst [vmem:[%s2951_s21 + $0x28] sm:$0xff] %v1577_v5  ;;  %v1597_v54 = vsel %vm1533_vm7, %v1565_v52, 0.0  ;;  %1613 = vst [vmem:[%s2951_s21 + $0x48] sm:$0xff] %v1581_v61  ;;  %v1375_v28 = vshrl.u32 %v3459_v30, 13 }
 0x19d   : > { %v1601_v36 = vsel %vm1537_vm8, %v1569_v42, 0.0  ;;  %1617 = vst [vmem:[%s2951_s21 + $0x68] sm:$0xff] %v1585_v62  ;;  %1621 = vst [vmem:[%s2951_s21 + $0x88] sm:$0xff] %v1589_v19  ;;  %v3460_v27 = vmul.u32 2246822507, %v2820_v43  ;;  %v1087_v41 = vrot.slane %v1951_v60, %v3472_v37  ;;  %v3474_v58 = vld [vmem:[#allocation56_spill] sm:$0xff] }
 0x19e   : > { %1625 = vst [vmem:[%s2951_s21 + $0xa8] sm:$0xff] %v1593_v46  ;;  %1629 = vst [vmem:[%s2951_s21 + $0xc8] sm:$0xff] %v1597_v54  ;;  %v3461_v6 = vmul.u32 2246822507, %v3395_v63  ;;  %v3462_v3 = vmul.u32 2246822507, %v3399_v21  ;;  %v3470_v63 = vmov %v3459_v30  ;;  %v3475_v12 = vsub.f32 %v3473_v40, %v3474_v58 }
 0x19f   : > { %v1379_v22 = vshrl.u32 %v3460_v27, 13  ;;  %1633 = vst [vmem:[%s2951_s21 + $0xe8] sm:$0xff] %v1601_v36  ;;  %v3463_v39 = vmul.u32 2246822507, %v3400_v44  ;;  %v3465_v47 = vmul.u32 2246822507, %v3464_v8  ;;  %v1407_v31 = vxor.u32 %v1375_v28, %v3470_v63 }
 0x1a0   : > { %v1387_v2 = vxor.u32 %v2851_v55, %v3461_v6  ;;  %v1391_v24 = vxor.u32 %v2866_v11, %v3462_v3  ;;  %v3468_v33 = vmul.u32 2246822507, %v3467_v48  ;;  %v3471_v55 = vmov %v3460_v27  ;;  %v1950_v44 = vld [vmem:[%s2262_s15] sm:$0xf]  ;;  %v3476_v26 = vld [vmem:[#allocation9_spill] sm:$0xff]  ;;  %v3480_v32 = vld [vmem:[#allocation47_spill] sm:$0xff] }
 0x1a1   : > { %v1395_v14 = vxor.u32 %v2870_v4, %v3463_v39  ;;  %v1399_v10 = vxor.u32 %v3466_v9, %v3465_v47  ;;  %v1411_v21 = vxor.u32 %v1379_v22, %v3471_v55  ;;  %v1415_v1 = vmul.u32 3266489909, %v1383_v16  ;;  %v3478_v25 = vld [vmem:[#allocation46_spill] sm:$0xff]  ;;  %v3484_v5 = vld [vmem:[#allocation51_spill] sm:$0xff] }
 0x1a2   : > { %v1403_v35 = vxor.u32 %v3469_v51, %v3468_v33  ;;  %v1419_v11 = vmul.u32 3266489909, %v1387_v2  ;;  %v1423_v34 = vmul.u32 3266489909, %v1391_v24  ;;  %v1141_v4 = vrot.slane %v1950_v44, %v3472_v37  ;;  %v3482_v52 = vld [vmem:[#allocation50_spill] sm:$0xff]  ;;  %v3488_v36 = vld [vmem:[#allocation55_spill] sm:$0xff] }
 0x1a3   : > { %v1427_v49 = vmul.u32 3266489909, %v1395_v14  ;;  %v1431_v17 = vmul.u32 3266489909, %v1399_v10  ;;  %v1447_v45 = vshrl.u32 %v1415_v1, 16  ;;  %v1041_v7 = vmul.f32 %v1949_v50, %v3475_v12  ;;  %v3486_v19 = vld [vmem:[#allocation54_spill] sm:$0xff] }
 0x1a4   : > { %v1435_v0 = vmul.u32 3266489909, %v1403_v35  ;;  %v1439_v53 = vmul.u32 3266489909, %v1407_v31  ;;  %v1451_v15 = vshrl.u32 %v1419_v11, 16  ;;  %v1455_v23 = vshrl.u32 %v1423_v34, 16 }
 0x1a5   : > { %v1443_v13 = vmul.u32 3266489909, %v1411_v21  ;;  %v1459_v43 = vshrl.u32 %v1427_v49, 16  ;;  %v1463_v20 = vshrl.u32 %v1431_v17, 16  ;;  %v3477_v38 = vsub.f32 %v3476_v26, %v3474_v58 }
 0x1a6   : > { %v3479_v56 = vsub.f32 %v3478_v25, %v3474_v58  ;;  %v3481_v18 = vsub.f32 %v3480_v32, %v3474_v58  ;;  %v3483_v42 = vsub.f32 %v3482_v52, %v3474_v58  ;;  %v3485_v61 = vsub.f32 %v3484_v5, %v3474_v58 }
 0x1a7   : > { %v1045_v29 = vmul.f32 %v1949_v50, %v3477_v38  ;;  %v3487_v46 = vsub.f32 %v3486_v19, %v3474_v58  ;;  %v3489_v30 = vsub.f32 %v3488_v36, %v3474_v58  ;;  %v1095_v27 = vmul.f32 %v1087_v41, %v1041_v7 }
 0x1a8   : > { %v1049_v57 = vmul.f32 %v1949_v50, %v3479_v56  ;;  %v1053_v16 = vmul.f32 %v1949_v50, %v3481_v18  ;;  %v1057_v59 = vmul.f32 %v1949_v50, %v3483_v42  ;;  %v1061_v62 = vmul.f32 %v1949_v50, %v3485_v61 }
 0x1a9   : > { %v1065_v54 = vmul.f32 %v1949_v50, %v3487_v46  ;;  %v1069_v28 = vmul.f32 %v1949_v50, %v3489_v30  ;;  %v1099_v22 = vmul.f32 %v1087_v41, %v1045_v29  ;;  %v1479_v14 = vxor.u32 %v1447_v45, %v1415_v1 }
 0x1aa   : > { %v1103_v6 = vmul.f32 %v1087_v41, %v1049_v57  ;;  %v1107_v2 = vmul.f32 %v1087_v41, %v1053_v16  ;;  %v1111_v3 = vmul.f32 %v1087_v41, %v1057_v59  ;;  %v1115_v24 = vmul.f32 %v1087_v41, %v1061_v62 }
 0x1ab   : > { %v1119_v39 = vmul.f32 %v1087_v41, %v1065_v54  ;;  %v1123_v8 = vmul.f32 %v1087_v41, %v1069_v28  ;;  %v1149_v47 = vadd.f32 %v1141_v4, %v1095_v27  ;;  %v1153_v9 = vadd.f32 %v1141_v4, %v1099_v22 }
 0x1ac   : > { %v1157_v10 = vadd.f32 %v1141_v4, %v1103_v6  ;;  %v1161_v48 = vadd.f32 %v1141_v4, %v1107_v2  ;;  %v1165_v33 = vadd.f32 %v1141_v4, %v1111_v3  ;;  %v1169_v51 = vadd.f32 %v1141_v4, %v1115_v24 }
 0x1ad   : > { %v1173_v35 = vadd.f32 %v1141_v4, %v1119_v39  ;;  %v1467_v63 = vshrl.u32 %v1435_v0, 16  ;;  %v1471_v31 = vshrl.u32 %v1439_v53, 16  ;;  %v1475_v55 = vshrl.u32 %v1443_v13, 16 }
 0x1ae   : > { %v1483_v21 = vxor.u32 %v1451_v15, %v1419_v11  ;;  %v1487_v44 = vxor.u32 %v1455_v23, %v1423_v34  ;;  %v1491_v37 = vxor.u32 %v1459_v43, %v1427_v49  ;;  %v1495_v60 = vxor.u32 %v1463_v20, %v1431_v17 }
 0x1af   : > { %vm1511_vm9 = vcmp.ge.u32.totalorder %v1479_v14, 429496729  ;;  %v1499_v50 = vxor.u32 %v1467_v63, %v1435_v0  ;;  %v1503_v1 = vxor.u32 %v1471_v31, %v1439_v53  ;;  %v1507_v41 = vxor.u32 %v1475_v55, %v1443_v13 }
 0x1b0   : > { %vm1515_vm10 = vcmp.ge.u32.totalorder %v1483_v21, 429496729  ;;  %v1177_v45 = vadd.f32 %v1141_v4, %v1123_v8  ;;  %vm1519_vm11 = vcmp.ge.u32.totalorder %v1487_v44, 429496729  ;;  %vm1523_vm12 = vcmp.ge.u32.totalorder %v1491_v37, 429496729 }
 0x1b1   : > { %vm1527_vm13 = vcmp.ge.u32.totalorder %v1495_v60, 429496729  ;;  %vm1531_vm14 = vcmp.ge.u32.totalorder %v1499_v50, 429496729  ;;  %vm1535_vm15 = vcmp.ge.u32.totalorder %v1503_v1, 429496729 }
 0x1b2   : > { %vm1539_vm0 = vcmp.ge.u32.totalorder %v1507_v41, 429496729  ;;  %v1543_v40 = vmul.f32 1.1111112, %v1149_v47  ;;  %v1547_v11 = vmul.f32 1.1111112, %v1153_v9 }
 0x1b3   : > { %v1551_v34 = vmul.f32 1.1111112, %v1157_v10  ;;  %v1555_v49 = vmul.f32 1.1111112, %v1161_v48  ;;  %v1559_v17 = vmul.f32 1.1111112, %v1165_v33 }
 0x1b4   : > { %v1563_v0 = vmul.f32 1.1111112, %v1169_v51  ;;  %v1567_v4 = vmul.f32 1.1111112, %v1173_v35  ;;  %v1571_v53 = vmul.f32 1.1111112, %v1177_v45 }
 0x1b5   : > { %v1575_v15 = vsel %vm1511_vm9, %v1543_v40, 0.0  ;;  %v1579_v13 = vsel %vm1515_vm10, %v1547_v11, 0.0  ;;  %v1583_v23 = vsel %vm1519_vm11, %v1551_v34, 0.0  ;;  %v1587_v43 = vsel %vm1523_vm12, %v1555_v49, 0.0 }
 0x1b6   : > { %v1591_v20 = vsel %vm1527_vm13, %v1559_v17, 0.0  ;;  %v1595_v58 = vsel %vm1531_vm14, %v1563_v0, 0.0  ;;  %1607 = vst [vmem:[%s2951_s21 + $0x18] sm:$0xff] %v1575_v15  ;;  %1611 = vst [vmem:[%s2951_s21 + $0x38] sm:$0xff] %v1579_v13  ;;  %v1599_v12 = vsel %vm1535_vm15, %v1567_v4, 0.0  ;;  %v1603_v7 = vsel %vm1539_vm0, %v1571_v53, 0.0 }
 0x1b7   : > { %1615 = vst [vmem:[%s2951_s21 + $0x58] sm:$0xff] %v1583_v23  ;;  %1619 = vst [vmem:[%s2951_s21 + $0x78] sm:$0xff] %v1587_v43 }
 0x1b8   : > { %1623 = vst [vmem:[%s2951_s21 + $0x98] sm:$0xff] %v1591_v20  ;;  %1627 = vst [vmem:[%s2951_s21 + $0xb8] sm:$0xff] %v1595_v58 }
 0x1b9   : > { %1631 = vst [vmem:[%s2951_s21 + $0xd8] sm:$0xff] %v1599_v12  ;;  %1635 = vst [vmem:[%s2951_s21 + $0xf8] sm:$0xff] %v1603_v7 }
 0x1ba   : > { %1965 = shalt.err (!%p1962_p4)
}
 0x1bb   : > { %s1966_s14 = scalar_lea.hbm %s3166_s10, 4096  ;;  %s1970_s17 = scalar_lea.hbm %s3235_s6, 8192 }
 0x1bc   : > { %p1967_p7 = scmp.ne.s32.totalorder %s3166_s10, %s1966_s14  ;;  %p1971_p10 = scmp.lt.u32.totalorder %s3166_s10, %s3235_s6 }
 0x1bd   : > { %p1972_p11 = scmp.lt.u32.totalorder %s1970_s17, %s1966_s14  ;;  %p1974_p13 = scmp.lt.u32.totalorder %s1966_s14, %s3166_s10 }
 0x1be   : > { %p1968_p8 = pnand %p1967_p7, %p2096_p5 }
 0x1bf   : > { %p1973_p12 = por %p1972_p11, %p1971_p10 }
 0x1c0   : > { %p1969_p9 = pneg %p1968_p8 }
 0x1c1   : > { %p1975_p0 = por %p1974_p13, %p1973_p12 }
 0x1c3   : > { %p1976_p1 = pnand %p1975_p0, %p1969_p9 }
 0x1c5   : > { %1979 = shalt.err (!%p1976_p1)
}
 0x1c6   : > { %s2017_s20 = smov 512   ;;  %s2018_s21 = smov 1024  }
 0x1c7   : > { %s2019_s27 = smov 32  }
 0x1c8   : > { %1864 = dma.vmem_to_hbm [thread:$0]  (%p2096_p5), %s3170_s22, 4096, %s3166_s10, %s3188_s0, %s2017_s20, %s2018_s21, %s2019_s27  }
 0x1c9 PF: > { %p1870_p2 = scmp.ge.s32.totalorder %s2014_s26, 2  ;;  %s1665_s30 = sand.u32 1, %s2002_s23  }
 0x1ca   : > { %s1666_s29 = scalar_lea.sflag [#allocation4], %s1665_s30 }
 0x1cb   : > { %p1867_p3 = pnand %p1870_p2, %p2100_p6 }
 0x1cd   : > { %1997 = dma.done.wait (!%p1867_p3), %s1666_s29, 4096  }
 0x1ce   : > { %1999 = vsyncadd (!%p1867_p3), %s1666_s29, 4294963200  ;;  %p17_p4 = scmp.ge.s32.totalorder %s2083_s28, 4   ;;  %s3490_s23 = smov %s2006_s24 }
 0x1cf   : > { %s3491_s24 = smov %s2010_s25  ;;  %s3492_s25 = smov %s2094_s7 }
 0x1d0   : > { %s3493_s26 = smov %s2083_s28  ;;  %19 = sbr.rel (!%p17_p4) target bundleno = 5 (0x5), region = 88 }
 0x1d7   :  { %1671 = vsyncpa [#allocation4], 1 }
 0x1d8   :  { %1673 = vsyncpa [#allocation4 + $0x1], 1 }

</bundles_post_ra>
